<compile_context>
chip_gen: v7x
topology: tpu7x:2x2x1
jax: 0.10.0
libtpu: 0.0.40
codegen_flags: <defaults>
</compile_context>

<pallas_src>
import functools
import math

import numpy as np
import jax
import jax.numpy as jnp
from jax.experimental import pallas as pl
from jax.experimental.pallas import tpu as pltpu


# ----------------------------------------------------------------------------
# Filtermap parameterization (faithful port of _ConvNd_filtermap_1x1_compression
# __init__ / reset_parameters / reset_parameters1 / extract_filters).
# This is parameter setup + weight-gather glue -> plain JAX & numpy.
# ----------------------------------------------------------------------------
def filtermap_config(in_channels, out_channels, kernel_size,
                     channel_compression_1x1=None, groups=1):
    kh, kw = kernel_size
    if kh == 1 and kw == 1:
        sample_y, sample_x = 1, 1
        sample_c = out_channels
        reduced_param = (in_channels // groups) * out_channels // channel_compression_1x1
        assert reduced_param >= in_channels
        stride_y, stride_x = 1, 1
        stride_c = reduced_param // sample_c
    else:
        if out_channels == 64:
            sample_y, sample_x, sample_c = 4, 4, 4
        elif out_channels == 128:
            sample_y, sample_x, sample_c = 8, 4, 4
        elif out_channels == 256:
            sample_y, sample_x, sample_c = 8, 8, 4
        elif out_channels == 512:
            sample_y, sample_x, sample_c = 8, 8, 8
        else:
            r = int(math.ceil(math.sqrt(out_channels)))
            sample_y, sample_x, sample_c = r, r, 1
        if in_channels // groups == 3 and out_channels == 64:
            sample_y, sample_x, sample_c = 8, 8, 1
        stride_y, stride_x = 2, 2
        stride_c = (in_channels // groups) // sample_c
    return dict(sample_y=sample_y, sample_x=sample_x, sample_c=sample_c,
                stride_y=stride_y, stride_x=stride_x, stride_c=int(stride_c),
                fm_channel=int(sample_c * stride_c),
                fm_height=int(sample_y * stride_y),
                fm_width=int(sample_x * stride_x),
                kh=kh, kw=kw, in_channels=in_channels,
                out_channels=out_channels, groups=groups)


def make_filtermap_params(key, cfg, bias=True):
    n = cfg["in_channels"] * cfg["kh"] * cfg["kw"]
    stdv = 1.0 / math.sqrt(n)
    k_fm, k_b = jax.random.split(key)
    fm = jax.random.uniform(
        k_fm, (cfg["fm_channel"], cfg["fm_height"], cfg["fm_width"]),
        dtype=jnp.float32, minval=-stdv, maxval=stdv)
    b = None
    if bias:
        b = jax.random.uniform(k_b, (cfg["out_channels"],), dtype=jnp.float32,
                               minval=-stdv, maxval=stdv)
    return fm, b


def build_gather_ids(cfg):
    """Exact reimplementation of reset_parameters1's `ids` construction."""
    kh, kw = cfg["kh"], cfg["kw"]
    fm_h, fm_w = cfg["fm_height"], cfg["fm_width"]
    if fm_h > 1 and fm_w > 1:
        ph, pw = fm_h + 1, fm_w + 1
    else:
        ph, pw = fm_h, fm_w
    in_channels = cfg["in_channels"] // cfg["groups"]

    ids = np.array([y * pw + x for y in range(kh) for x in range(kw)], dtype=np.int64)
    tmp = ids
    for c in range(1, in_channels):
        ids = np.concatenate([ids, tmp + c * ph * pw])
    tmp = ids
    for y in range(cfg["sample_y"]):
        for x in range(cfg["sample_x"]):
            if y == 0 and x == 0:
                continue
            ids = np.concatenate(
                [ids, tmp + (y * cfg["stride_y"] * pw + x * cfg["stride_x"])])
    tmp = ids
    for c in range(1, cfg["sample_c"]):
        ids = np.concatenate([ids, tmp + c * cfg["stride_c"] * ph * pw])
    return ids


def extract_filters(filtermap, ids, cfg, binary_filtermap=False):
    """filtermap (fm_c, fm_h, fm_w) -> conv weight (O, I, kh, kw)."""
    fm_c, fm_h, fm_w = filtermap.shape
    pad = jnp.concatenate([filtermap, filtermap], axis=0)          # depth 2*fm_c
    if fm_h > 1 and fm_w > 1:
        pad = jnp.concatenate([pad, pad[:, 1:2, :]], axis=1)       # height fm_h+1
        pad = jnp.concatenate([pad, pad[:, :, 1:2]], axis=2)       # width  fm_w+1
    w = pad.reshape(-1)[jnp.asarray(ids)]
    w = w.reshape(cfg["out_channels"], cfg["in_channels"] // cfg["groups"],
                  cfg["kh"], cfg["kw"])
    if binary_filtermap:
        l1 = jnp.sum(jnp.abs(w), axis=(1, 2, 3), keepdims=True)
        w = jnp.sign(w) * l1
    return w


# ----------------------------------------------------------------------------
# Pallas kernel: fused im2col convolution (one MXU matmul per grid step)
# ----------------------------------------------------------------------------
def _conv_kernel(x_ref, w_ref, b_ref, o_ref, *, kh, kw, th, w_out, cin, cout):
    # x_ref : (Hp, Wp, Cin)        zero-padded input image for this batch (bf16)
    # w_ref : (kh*kw*Cin, Cout)    im2col weight (bf16)
    # b_ref : (1, Cout)            bias (f32)
    # o_ref : (TH, W_out, Cout)    output row-tile (f32), lane-dense (Cout % 128 == 0)
    r0 = pl.multiple_of(pl.program_id(1) * th, th)   # first output row of this tile
    cols = []
    for ky in range(kh):
        for kx in range(kw):
            # Slice the Ref directly (plain vlds) — never slice a fully loaded value.
            patch = x_ref[pl.ds(r0 + ky, th), pl.ds(kx, w_out), :]
            cols.append(patch.reshape(th * w_out, cin))
    lhs = cols[0] if len(cols) == 1 else jnp.concatenate(cols, axis=1)
    acc = jnp.dot(lhs, w_ref[...], preferred_element_type=jnp.float32)  # K = kh*kw*Cin
    acc = acc + b_ref[...]
    o_ref[...] = acc.reshape(th, w_out, cout)


def pallas_conv2d(x_nchw, w_oihw, bias, stride=(1, 1), padding=(0, 0),
                  dilation=(1, 1), groups=1):
    # TODO(synk): general stride / dilation / groups (module defaults are 1) are not
    # implemented in the Pallas fast path.
    assert stride == (1, 1) and dilation == (1, 1) and groups == 1
    N, cin, H, W = x_nchw.shape
    cout, cin_w, kh, kw = w_oihw.shape
    assert cin_w == cin
    ph, pw = padding
    h_out = H + 2 * ph - kh + 1
    w_out = W + 2 * pw - kw + 1
    hp, wp = H + 2 * ph, W + 2 * pw

    # NHWC, spatial zero-pad, bf16 operands for the MXU (accumulation stays f32).
    x_nhwc = jnp.transpose(x_nchw, (0, 2, 3, 1))
    x_pad = jnp.pad(x_nhwc, ((0, 0), (ph, ph), (pw, pw), (0, 0))).astype(jnp.bfloat16)
    # OIHW -> (kh*kw*Cin, Cout); row order matches the in-kernel im2col concat.
    w_mat = jnp.transpose(w_oihw, (2, 3, 1, 0)).reshape(kh * kw * cin, cout)
    w_mat = w_mat.astype(jnp.bfloat16)
    if bias is None:
        bias = jnp.zeros((cout,), jnp.float32)
    b_row = bias.reshape(1, cout).astype(jnp.float32)

    # Output-row tile: largest divisor of h_out whose im2col lhs stays small
    # (keeps live values near the vreg file and well inside v7x's 64 MiB VMEM).
    th = 1
    for cand in (32, 16, 8, 4, 2, 1):
        if h_out % cand == 0 and cand * w_out * kh * kw * cin * 2 <= 256 * 1024:
            th = cand
            break

    kernel = functools.partial(_conv_kernel, kh=kh, kw=kw, th=th,
                               w_out=w_out, cin=cin, cout=cout)

    out_nhwc = pl.pallas_call(
        kernel,
        out_shape=jax.ShapeDtypeStruct((N, h_out, w_out, cout), jnp.float32),
        grid=(N, h_out // th),
        in_specs=[
            pl.BlockSpec((None, hp, wp, cin), lambda n, r: (n, 0, 0, 0)),
            pl.BlockSpec((kh * kw * cin, cout), lambda n, r: (0, 0)),
            pl.BlockSpec((1, cout), lambda n, r: (0, 0)),
        ],
        out_specs=pl.BlockSpec((None, th, w_out, cout), lambda n, r: (n, r, 0, 0)),
        compiler_params=pltpu.CompilerParams(
            dimension_semantics=("parallel", "parallel"),
            vmem_limit_bytes=32 * 1024 * 1024),
    )(x_pad, w_mat, b_row)

    return jnp.transpose(out_nhwc, (0, 3, 1, 2))   # back to NCHW


def conv2d_filtermap_forward(x, filtermap, bias, cfg, ids, *,
                             padding=(0, 0), binary_filtermap=False):
    """Forward of Conv2d_filtermap_1x1_compression (stride=1, dilation=1, groups=1)."""
    w = extract_filters(filtermap, ids, cfg, binary_filtermap)   # glue: index gather
    return pallas_conv2d(x, w, bias, stride=(1, 1), padding=padding)


# ----------------------------------------------------------------------------
# Pure-JAX reference (same bf16-quantized operands as the kernel)
# ----------------------------------------------------------------------------
def reference_forward(x, w, bias, padding=(0, 0)):
    out = jax.lax.conv_general_dilated(
        x, w, window_strides=(1, 1),
        padding=((padding[0], padding[0]), (padding[1], padding[1])),
        dimension_numbers=("NCHW", "OIHW", "NCHW"))
    if bias is not None:
        out = out + bias.reshape(1, -1, 1, 1)
    return out


# ----------------------------------------------------------------------------
if __name__ == "__main__":
    key = jax.random.PRNGKey(0)
    k_x, k_p3, k_p1 = jax.random.split(key, 3)

    # Small, module-consistent shapes (the filtermap sampling tables are defined
    # for ResNet channel counts; Cout=128 keeps the output lane-dense).
    N, C, H, W = 2, 64, 16, 16
    x = jax.random.normal(k_x, (N, C, H, W), dtype=jnp.float32)

    cases = []

    # --- case 1: 3x3 filtermap conv, 64 -> 128, padding=1 (ResNet-style) -------
    cfg3 = filtermap_config(C, 128, (3, 3))
    fm3, b3 = make_filtermap_params(k_p3, cfg3, bias=True)
    ids3 = build_gather_ids(cfg3)
    out3 = conv2d_filtermap_forward(x, fm3, b3, cfg3, ids3, padding=(1, 1))
    cases.append((out3, extract_filters(fm3, ids3, cfg3), b3, (1, 1)))

    # --- case 2: 1x1 compression conv, 64 -> 128, channel_compression_1x1=4 ----
    cfg1 = filtermap_config(C, 128, (1, 1), channel_compression_1x1=4)
    fm1, b1 = make_filtermap_params(k_p1, cfg1, bias=True)
    ids1 = build_gather_ids(cfg1)
    out1 = conv2d_filtermap_forward(x, fm1, b1, cfg1, ids1, padding=(0, 0))
    cases.append((out1, extract_filters(fm1, ids1, cfg1), b1, (0, 0)))

    # Correctness: compare against XLA conv on the same bf16-quantized operands
    # (the Pallas matmul uses bf16 inputs with f32 accumulation).
    xq = x.astype(jnp.bfloat16).astype(jnp.float32)
    for out, w, b, pad in cases:
        out = jax.block_until_ready(out)
        wq = w.astype(jnp.bfloat16).astype(jnp.float32)
        ref = jax.block_until_ready(reference_forward(xq, wq, b, padding=pad))
        max_err = float(jnp.max(jnp.abs(out - ref)))
        assert max_err < 1e-2, f"mismatch vs reference: {max_err}"

    print("KERNEL_OK")
</pallas_src>

<mosaic_0001>
module attributes {stable_mosaic.version = 11 : i64} {
  func.func @_conv_kernel(%arg0: i32, %arg1: i32, %arg2: memref<1x18x18x64xbf16, #tpu.memory_space<vmem>>, %arg3: memref<576x128xbf16, #tpu.memory_space<vmem>>, %arg4: memref<1x128xf32, #tpu.memory_space<vmem>>, %arg5: memref<1x8x16x128xf32, #tpu.memory_space<vmem>>) attributes {dimension_semantics = [#tpu.dimension_semantics<parallel>, #tpu.dimension_semantics<parallel>], iteration_bounds = array<i64: 2, 2>, scalar_prefetch = 0 : i64, scratch_operands = 0 : i64, tpu.core_type = #tpu.core_type<tc>, window_params = [{transform_indices = @transform_0, window_bounds = array<i64: 1, 18, 18, 64>}, {pipeline_mode = #tpu.pipeline_mode<synchronous>, transform_indices = @transform_1, window_bounds = array<i64: 576, 128>}, {pipeline_mode = #tpu.pipeline_mode<synchronous>, transform_indices = @transform_2, window_bounds = array<i64: 1, 128>}, {transform_indices = @transform_3, window_bounds = array<i64: 1, 8, 16, 128>}]} {
    %c8_i32 = arith.constant 8 : i32
    %0 = arith.muli %arg1, %c8_i32 : i32
    %1 = tpu.assume_multiple %0, 8 : i32
    %c0_i32 = arith.constant 0 : i32
    %2 = arith.addi %1, %c0_i32 : i32
    %c0 = arith.constant 0 : index
    %3 = arith.index_cast %2 : i32 to index
    %c0_0 = arith.constant 0 : index
    %c0_1 = arith.constant 0 : index
    %4 = vector.load %arg2[%c0, %3, %c0_0, %c0_1] : memref<1x18x18x64xbf16, #tpu.memory_space<vmem>>, vector<1x8x16x64xbf16>
    %5 = vector.shape_cast %4 : vector<1x8x16x64xbf16> to vector<8x16x64xbf16>
    %6 = vector.shape_cast %5 : vector<8x16x64xbf16> to vector<128x64xbf16>
    %c0_i32_2 = arith.constant 0 : i32
    %7 = arith.addi %1, %c0_i32_2 : i32
    %c0_3 = arith.constant 0 : index
    %8 = arith.index_cast %7 : i32 to index
    %c1 = arith.constant 1 : index
    %c0_4 = arith.constant 0 : index
    %9 = vector.load %arg2[%c0_3, %8, %c1, %c0_4] : memref<1x18x18x64xbf16, #tpu.memory_space<vmem>>, vector<1x8x16x64xbf16>
    %10 = vector.shape_cast %9 : vector<1x8x16x64xbf16> to vector<8x16x64xbf16>
    %11 = vector.shape_cast %10 : vector<8x16x64xbf16> to vector<128x64xbf16>
    %c0_i32_5 = arith.constant 0 : i32
    %12 = arith.addi %1, %c0_i32_5 : i32
    %c0_6 = arith.constant 0 : index
    %13 = arith.index_cast %12 : i32 to index
    %c2 = arith.constant 2 : index
    %c0_7 = arith.constant 0 : index
    %14 = vector.load %arg2[%c0_6, %13, %c2, %c0_7] : memref<1x18x18x64xbf16, #tpu.memory_space<vmem>>, vector<1x8x16x64xbf16>
    %15 = vector.shape_cast %14 : vector<1x8x16x64xbf16> to vector<8x16x64xbf16>
    %16 = vector.shape_cast %15 : vector<8x16x64xbf16> to vector<128x64xbf16>
    %c1_i32 = arith.constant 1 : i32
    %17 = arith.addi %1, %c1_i32 : i32
    %c0_8 = arith.constant 0 : index
    %18 = arith.index_cast %17 : i32 to index
    %c0_9 = arith.constant 0 : index
    %c0_10 = arith.constant 0 : index
    %19 = vector.load %arg2[%c0_8, %18, %c0_9, %c0_10] : memref<1x18x18x64xbf16, #tpu.memory_space<vmem>>, vector<1x8x16x64xbf16>
    %20 = vector.shape_cast %19 : vector<1x8x16x64xbf16> to vector<8x16x64xbf16>
    %21 = vector.shape_cast %20 : vector<8x16x64xbf16> to vector<128x64xbf16>
    %c1_i32_11 = arith.constant 1 : i32
    %22 = arith.addi %1, %c1_i32_11 : i32
    %c0_12 = arith.constant 0 : index
    %23 = arith.index_cast %22 : i32 to index
    %c1_13 = arith.constant 1 : index
    %c0_14 = arith.constant 0 : index
    %24 = vector.load %arg2[%c0_12, %23, %c1_13, %c0_14] : memref<1x18x18x64xbf16, #tpu.memory_space<vmem>>, vector<1x8x16x64xbf16>
    %25 = vector.shape_cast %24 : vector<1x8x16x64xbf16> to vector<8x16x64xbf16>
    %26 = vector.shape_cast %25 : vector<8x16x64xbf16> to vector<128x64xbf16>
    %c1_i32_15 = arith.constant 1 : i32
    %27 = arith.addi %1, %c1_i32_15 : i32
    %c0_16 = arith.constant 0 : index
    %28 = arith.index_cast %27 : i32 to index
    %c2_17 = arith.constant 2 : index
    %c0_18 = arith.constant 0 : index
    %29 = vector.load %arg2[%c0_16, %28, %c2_17, %c0_18] : memref<1x18x18x64xbf16, #tpu.memory_space<vmem>>, vector<1x8x16x64xbf16>
    %30 = vector.shape_cast %29 : vector<1x8x16x64xbf16> to vector<8x16x64xbf16>
    %31 = vector.shape_cast %30 : vector<8x16x64xbf16> to vector<128x64xbf16>
    %c2_i32 = arith.constant 2 : i32
    %32 = arith.addi %1, %c2_i32 : i32
    %c0_19 = arith.constant 0 : index
    %33 = arith.index_cast %32 : i32 to index
    %c0_20 = arith.constant 0 : index
    %c0_21 = arith.constant 0 : index
    %34 = vector.load %arg2[%c0_19, %33, %c0_20, %c0_21] : memref<1x18x18x64xbf16, #tpu.memory_space<vmem>>, vector<1x8x16x64xbf16>
    %35 = vector.shape_cast %34 : vector<1x8x16x64xbf16> to vector<8x16x64xbf16>
    %36 = vector.shape_cast %35 : vector<8x16x64xbf16> to vector<128x64xbf16>
    %c2_i32_22 = arith.constant 2 : i32
    %37 = arith.addi %1, %c2_i32_22 : i32
    %c0_23 = arith.constant 0 : index
    %38 = arith.index_cast %37 : i32 to index
    %c1_24 = arith.constant 1 : index
    %c0_25 = arith.constant 0 : index
    %39 = vector.load %arg2[%c0_23, %38, %c1_24, %c0_25] : memref<1x18x18x64xbf16, #tpu.memory_space<vmem>>, vector<1x8x16x64xbf16>
    %40 = vector.shape_cast %39 : vector<1x8x16x64xbf16> to vector<8x16x64xbf16>
    %41 = vector.shape_cast %40 : vector<8x16x64xbf16> to vector<128x64xbf16>
    %c2_i32_26 = arith.constant 2 : i32
    %42 = arith.addi %1, %c2_i32_26 : i32
    %c0_27 = arith.constant 0 : index
    %43 = arith.index_cast %42 : i32 to index
    %c2_28 = arith.constant 2 : index
    %c0_29 = arith.constant 0 : index
    %44 = vector.load %arg2[%c0_27, %43, %c2_28, %c0_29] : memref<1x18x18x64xbf16, #tpu.memory_space<vmem>>, vector<1x8x16x64xbf16>
    %45 = vector.shape_cast %44 : vector<1x8x16x64xbf16> to vector<8x16x64xbf16>
    %46 = vector.shape_cast %45 : vector<8x16x64xbf16> to vector<128x64xbf16>
    %47 = tpu.concatenate %6, %11, %16, %21, %26, %31, %36, %41, %46 in 1 : vector<128x64xbf16>, vector<128x64xbf16>, vector<128x64xbf16>, vector<128x64xbf16>, vector<128x64xbf16>, vector<128x64xbf16>, vector<128x64xbf16>, vector<128x64xbf16>, vector<128x64xbf16> -> vector<128x576xbf16>
    %c0_30 = arith.constant 0 : index
    %c0_31 = arith.constant 0 : index
    %48 = vector.load %arg3[%c0_30, %c0_31] : memref<576x128xbf16, #tpu.memory_space<vmem>>, vector<576x128xbf16>
    %cst = arith.constant dense<0.000000e+00> : vector<128x128xf32>
    %49 = tpu.matmul %47, %48, %cst {dimension_numbers = #tpu.dot_dimension_numbers<[1], [0], [0], [1], [0, 0, 1, 1], [], []>} : vector<128x576xbf16>, vector<576x128xbf16>, vector<128x128xf32> -> vector<128x128xf32>
    %c0_32 = arith.constant 0 : index
    %c0_33 = arith.constant 0 : index
    %50 = vector.load %arg4[%c0_32, %c0_33] : memref<1x128xf32, #tpu.memory_space<vmem>>, vector<1x128xf32>
    %51 = vector.broadcast %50 : vector<1x128xf32> to vector<128x128xf32>
    %52 = arith.addf %49, %51 : vector<128x128xf32>
    %53 = vector.shape_cast %52 : vector<128x128xf32> to vector<8x16x128xf32>
    %c0_34 = arith.constant 0 : index
    %c0_35 = arith.constant 0 : index
    %c0_36 = arith.constant 0 : index
    %c0_37 = arith.constant 0 : index
    %54 = vector.load %arg5[%c0_34, %c0_35, %c0_36, %c0_37] : memref<1x8x16x128xf32, #tpu.memory_space<vmem>>, vector<1x8x16x128xf32>
    %55 = vector.shape_cast %54 : vector<1x8x16x128xf32> to vector<8x16x128xf32>
    %56 = vector.shape_cast %53 : vector<8x16x128xf32> to vector<1x8x16x128xf32>
    tpu.vector_store %arg5[%c0_34, %c0_35, %c0_36, %c0_37], %56 {strides = array<i32>} : memref<1x8x16x128xf32, #tpu.memory_space<vmem>>, vector<1x8x16x128xf32>,
    return
  }
  func.func @transform_0(%arg0: i32, %arg1: i32) -> (i32, i32, i32, i32) {
    %c0_i32 = arith.constant 0 : i32
    %c0_i32_0 = arith.constant 0 : i32
    %c0_i32_1 = arith.constant 0 : i32
    %c0_i32_2 = arith.constant 0 : i32
    return %arg0, %c0_i32, %c0_i32_0, %c0_i32_1 : i32, i32, i32, i32
  }
  func.func @transform_1(%arg0: i32, %arg1: i32) -> (i32, i32) {
    %c0_i32 = arith.constant 0 : i32
    %c0_i32_0 = arith.constant 0 : i32
    %c0_i32_1 = arith.constant 0 : i32
    return %c0_i32, %c0_i32_0 : i32, i32
  }
  func.func @transform_2(%arg0: i32, %arg1: i32) -> (i32, i32) {
    %c0_i32 = arith.constant 0 : i32
    %c0_i32_0 = arith.constant 0 : i32
    %c0_i32_1 = arith.constant 0 : i32
    return %c0_i32, %c0_i32_0 : i32, i32
  }
  func.func @transform_3(%arg0: i32, %arg1: i32) -> (i32, i32, i32, i32) {
    %c0_i32 = arith.constant 0 : i32
    %c0_i32_0 = arith.constant 0 : i32
    %c0_i32_1 = arith.constant 0 : i32
    return %arg0, %arg1, %c0_i32, %c0_i32_0 : i32, i32, i32, i32
  }
}

</mosaic_0001>

<bundles_post_ra>
// kernel: tpu_custom_call.1
= control target key start
LH: loop header
LB: loop body
LE: loop exit
PB: predicated region body
PF: predicated region fallthrough
CT: control target
= control target key end

     0   :  { %8 = vsyncpa [#allocation3], 0  ;;  %s4117_s0 = inlined_call_operand.vmem [shape: bf16[2,18,18,64], index: 0, kind: input, shape index: {}]   ;;  %s4118_s1 = inlined_call_operand.vmem [shape: bf16[576,128], index: 1, kind: input, shape index: {}]   ;;  %s4119_s2 = inlined_call_operand.vmem [shape: f32[1,128], index: 2, kind: input, shape index: {}]   ;;  %s4120_s3 = inlined_call_operand.hbm [shape: f32[2,16,16,128], index: 3, kind: output, shape index: {}]  }
   0x1   :  { %10 = vsyncpa [#allocation3 + $0x1], 0  ;;  %s2963_s12 = smov 0   ;;  %s2965_s13 = smov 0  }
   0x2   :  { %s2967_s14 = smov 0   ;;  %s2969_s15 = smov 0  }
   0x3   :  { %s2971_s16 = smov 0   ;;  %s2973_s17 = smov 0  }
   0x4   :  { %s2975_s18 = smov 0   ;;  %s2977_s19 = smov 0  }
   0x5 LB: > { %s2277_s20 = sadd.s32 4294967295, %s2937_s19   ;;  %s2278_s21 = sadd.s32 4294967294, %s2937_s19   ;;  %s2937_s19 = sphi %s2977_s19, %s16_s19   ;;  %s2933_s18 = sphi %s2975_s18, %s4186_s18   ;;  %s2929_s17 = sphi %s2973_s17, %s4185_s17   ;;  %s2925_s16 = sphi %s2971_s16, %s4184_s16   ;;  %s2921_s15 = sphi %s2969_s15, %s4183_s15   ;;  %s2917_s14 = sphi %s2967_s14, %s4182_s14   ;;  %s2913_s13 = sphi %s2965_s13, %s4181_s13   ;;  %s2909_s12 = sphi %s2963_s12, %s4180_s12  }
   0x6   : > { %s25_s22 = sadd.s32 1, %s2929_s17  ;;  %s28_s23 = sadd.s32 1, %s2933_s18 }
   0x7   : > { %p26_p0 = scmp.ge.s32.totalorder %s25_s22, 2  ;;  %p115_p1 = scmp.ne.s32.totalorder %s2917_s14, %s2913_s13 }
   0x8   : > { %p116_p2 = scmp.eq.s32.totalorder %s2277_s20, 3  ;;  %p121_p5 = scmp.ne.s32.totalorder %s2913_s13, %s2909_s12 }
   0x9   : > { %s4188_s22 = smov (%p26_p0, %s25_s22), 0  ;;  %s4190_s23 = smov (!%p26_p0, %s28_s23), %s2933_s18 }
   0xa   : > { %s101_s24 = ssub.s32 %s2929_s17, %s4188_s22  ;;  %p3014_p3 = por %p116_p2, %p115_p1 }
   0xb   : > { %p30_p4 = scmp.ge.s32.totalorder %s4190_s23, 2  ;;  %p122_p6 = scmp.eq.s32.totalorder %s2278_s21, 3 }
   0xc   : > { %p2281_p7 = scmp.ge.s32.totalorder %s2937_s19, 1  ;;  %p154_p9 = scmp.lt.s32.totalorder %s2937_s19, 5 }
   0xd   : > { %s4192_s23 = smov (%p30_p4, %s4190_s23), 0  ;;  %p3023_p8 = por %p122_p6, %p121_p5 }
   0xe   : > { %s100_s27 = ssub.s32 %s2933_s18, %s4192_s23  ;;  %s105_s28 = sadd.s32 1, %s2917_s14 }
   0xf   : > { %s102_s29 = sor.u32 %s101_s24, %s100_s27  ;;  %p155_p10 = pnand %p2281_p7, %p154_p9 }
  0x10   : > { %p103_p11 = scmp.eq.s32.totalorder %s102_s29, 0 }
  0x11   : > { %158 = sbr.rel (%p155_p10) target bundleno = 499 (0x1f3), region = 32 }
  0x12   : > { %s3032_s30 = scalar_select %p103_p11, %s2917_s14, %s105_s28  }
  0x18   : > { %p178_p12 = scmp.lt.s32.totalorder %s2925_s16, 1  ;;  %vm440_vm0 = vcmask 1042432   ;;  %vm441_vm1 = vcmask 1046532   ;;  %v2760_v0 = vld [vmem:[%s4118_s1 + $0x40] sm:$0xff]   ;;  %s2503_s7 = smul.u32 96, %s2921_s15  ;;  %v2764_v5 = vld [vmem:[%s4118_s1 + $0x48] sm:$0xff]  }
  0x19   : > { %vm3039_vm2 = vmor %vm440_vm0, %vm441_vm1  ;;  %2505 = vmatprep.subr.bf16.mxu0 %v2760_v0  ;;  %v2761_v2 = vld [vmem:[%s4118_s1 + $0xc0] sm:$0xff]   ;;  %v2765_v6 = vld [vmem:[%s4118_s1 + $0xc8] sm:$0xff]   ;;  %s2939_s11 = smov 64   ;;  %vm213_vm3 = vsmask.f32 3328  ;;  %vm1419_vm6 = vcmask 523264  }
  0x1a   : > { %s179_s6 = scalar_select %p178_p12, %s2925_s16, 1  ;;  %v2762_v3 = vld [vmem:[%s4118_s1] sm:$0xff]   ;;  %2569 = vmatprep.subr.bf16.mxu1 %v2761_v2  ;;  %v2766_v21 = vld [vmem:[%s4118_s1 + $0x8] sm:$0xff]   ;;  %vm214_vm4 = vsmask.f32 7440  ;;  %v2768_v41 = vld [vmem:[%s4118_s1 + $0x50] sm:$0xff]  }
  0x1b   : > { %v2763_v4 = vld [vmem:[%s4118_s1 + $0x80] sm:$0xff]   ;;  %2506 = vmatpush3.bf16.msra.mxu0 %v2762_v3  ;;  %v2767_v30 = vld [vmem:[%s4118_s1 + $0x88] sm:$0xff]   ;;  %vm3096_vm5 = vmor %vm213_vm3, %vm214_vm4  ;;  %s2504_s21 = sshll.u32 %s2921_s15, 4  ;;  %s2499_s24 = sshll.u32 %s2925_s16, 5 }
  0x1c   : > { %s2677_s10 = smul.u32 216, %s179_s6  ;;  %2570 = vmatpush3.bf16.msra.mxu1 %v2763_v4  ;;  %2507 = vmatprep.subr.bf16.mxu0 %v2764_v5  ;;  %v2769_v47 = vld [vmem:[%s4118_s1 + $0xd0] sm:$0xff]   ;;  %v3981_v1 = vld [vmem:[%s4119_s2] ss:$0 sm:$0xff]  ;;  %s2188_s27 = sadd.s32 %s2504_s21, %s2499_s24 }
  0x1d   : > { %2571 = vmatprep.subr.bf16.mxu1 %v2765_v6  ;;  %s2500_s15 = sshll.u32 %s2188_s27, 7  ;;  %s2940_s6 = smov [#allocation2]  }
  0x1e   : > { %s182_s29 = scalar_lea.vmem %s4117_s0, %s2677_s10 }
  0x1f   : > { %s3059_s8 = scalar_lea.vmem %s182_s29, %s2503_s7  ;;  %2508 = vmatpush3.bf16.msra.mxu0 %v2766_v21  ;;  %s175_s7 = sand.u32 1, %s2913_s13  }
  0x20   : > { %v2298_v7 = vld [vmem:[%s3059_s8 + $0x10] sm:$0xf]  ;;  %v3066_v8 = vld [vmem:[%s3059_s8 + $0x14] sm:$0x1]  ;;  %v2321_v9 = vld [vmem:[%s3059_s8 + $0xc] sm:$0xe]  ;;  %2572 = vmatpush3.bf16.msra.mxu1 %v2767_v30  ;;  %2509 = vmatprep.subr.bf16.mxu0 %v2768_v41  ;;  %s4053_s29 = scalar_lea.hbm %s4120_s3, %s2500_s15 }
  0x21   : > { %v2329_v10 = vrot.slane %v2321_v9, 9  ;;  %v753_v11 = vrot.slane %v2298_v7, 5  ;;  %v756_v12 = vrot.slane %v3066_v8, 5  ;;  %v3071_v13 = vld [vmem:[%s3059_s8 + $0xc] sm:$0xf]  ;;  %2573 = vmatprep.subr.bf16.mxu1 %v2769_v47  ;;  %v2770_v9 = vld [vmem:[%s4118_s1 + $0x10] sm:$0xff]  }
  0x22   : > { %v2403_v14 = vcombine.low %v3071_v13, %v2298_v7  ;;  %v2339_v15 = vld [vmem:[%s3059_s8 + $0x18] sm:$0xf]  ;;  %v2340_v16 = vld [vmem:[%s3059_s8 + $0x1c] sm:$0xf]  ;;  %v2355_v19 = vld [vmem:[%s3059_s8 + $0x20] sm:$0x1] }
  0x23   : > { %v754_v17 = vsel %vm3039_vm2, %v2329_v10, %v753_v11  ;;  %v755_v18 = vrot.slane %v753_v11, 4  ;;  %v836_v20 = vshrl.u32 %v2339_v15, 16  ;;  %v839_v22 = vshll.u32 %v2339_v15, 16  ;;  %v189_v24 = vld [vmem:[%s3059_s8] sm:$0xf]  ;;  %2510 = vmatpush3.bf16.msra.mxu0 %v2770_v9  ;;  %s2282_s10 = sshll.u32 %s175_s7, 7 }
  0x24   : > { %1243 = vrot.lane.b32.xlu0 %v2403_v14, %s2939_s11  ;;  %v845_v23 = vshll.u32 %v2340_v16, 16  ;;  %v849_v27 = vshrl.u32 %v2340_v16, 16  ;;  %v855_v28 = vshll.u32 %v2355_v19, 16  ;;  %v190_v29 = vld [vmem:[%s3059_s8 + $0x4] sm:$0xf]  ;;  %v217_v36 = vshrl.u32 %v189_v24, 16 }
  0x25   : > { %v757_v25 = vsel %vm3039_vm2, %v755_v18, %v756_v12  ;;  %v838_v26 = vrot.slane %v836_v20, 4  ;;  %v841_v32 = vrot.slane %v839_v22, 5  ;;  %v205_v34 = vld [vmem:[%s3059_s8 + $0x8] sm:$0x1]  ;;  %v220_v39 = vshll.u32 %v189_v24, 16  ;;  %v2772_v20 = vld [vmem:[%s4118_s1 + $0x58] sm:$0xff]  }
  0x26   : > { %v2419_v31 = vcombine.low %v754_v17, %v757_v25  ;;  %v847_v33 = vrot.slane %v845_v23, 5  ;;  %v851_v35 = vrot.slane %v849_v27, 4  ;;  %v857_v38 = vrot.slane %v855_v28, 5  ;;  %v2341_v53 = vld [vmem:[%s3059_s8 + $0x24] sm:$0xf]  ;;  %2511 = vmatprep.subr.bf16.mxu0 %v2772_v20  ;;  %s4026_s20 = scalar_lea.vmem [#allocation2], %s2282_s10 }
  0x27   : > { %v842_v37 = vor.u32 %v841_v32, %v838_v26  ;;  %v226_v40 = vshll.u32 %v190_v29, 16  ;;  %v219_v44 = vrot.slane %v217_v36, 4  ;;  %v230_v45 = vshrl.u32 %v190_v29, 16  ;;  %v3107_v56 = vld [vmem:[%s3059_s8 + $0x18] sm:$0xf]  ;;  %s2191_s16 = sshll.u32 %s4026_s20, 4  ;;  %s4055_s16 = int_to_ptr.vmem [resolvable:$true] %s2191_s16 }
  0x28   : > { %1307 = vrot.lane.b32.xlu1 %v2419_v31, %s2939_s11  ;;  %v852_v43 = vor.u32 %v851_v35, %v847_v33  ;;  %v236_v46 = vshll.u32 %v205_v34, 16  ;;  %v222_v49 = vrot.slane %v220_v39, 5  ;;  %v3110_v57 = vld [vmem:[%s3059_s8 + $0x1c] sm:$0xf]  ;;  %v2342_v61 = vld [vmem:[%s3059_s8 + $0x28] sm:$0xf] }
  0x29   : > { %v843_v48 = vrot.slane %v842_v37, 4  ;;  %v228_v50 = vrot.slane %v226_v40, 5  ;;  %v232_v52 = vrot.slane %v230_v45, 4  ;;  %v528_v62 = vshrl.u32 %v3071_v13, 16  ;;  %v2356_v2 = vld [vmem:[%s3059_s8 + $0x2c] sm:$0x1] }
  0x2a   : > { %v853_v51 = vrot.slane %v852_v43, 4  ;;  %v223_v55 = vor.u32 %v222_v49, %v219_v44  ;;  %v238_v60 = vrot.slane %v236_v46, 5  ;;  %v860_v3 = vshrl.u32 %v2341_v53, 16  ;;  %v191_v15 = vld [vmem:[%s3059_s8 + $0xc] sm:$0xf]  ;;  %v2773_v26 = vld [vmem:[%s4118_s1 + $0xd8] sm:$0xff]  }
  0x2b   : > { %v848_v54 = vsel %vm3096_vm5, %v843_v48, %v847_v33  ;;  %v233_v59 = vor.u32 %v232_v52, %v228_v50  ;;  %v531_v4 = vshll.u32 %v3071_v13, 16  ;;  %v2404_v6 = vcombine.low %v3107_v56, %v3110_v57  ;;  %v2771_v13 = vld [vmem:[%s4118_s1 + $0x90] sm:$0xff]   ;;  %v2774_v31 = vld [vmem:[%s4118_s1 + $0x18] sm:$0xff]   ;;  %v3151_v45 = vld [vmem:[%s3059_s8 + $0x20] sm:$0x1]  ;;  %s4065_s4 = scalar_lea.sflag [#allocation3], %s175_s7 }
  0x2c   : > { %v858_v58 = vsel %vm3096_vm5, %v853_v51, %v857_v38  ;;  %v224_v0 = vrot.slane %v223_v55, 4  ;;  %v863_v7 = vshll.u32 %v2341_v53, 16  ;;  %v862_v11 = vrot.slane %v860_v3, 4  ;;  %v192_v19 = vld [vmem:[%s3059_s8 + $0x10] sm:$0xf]  ;;  %2574 = vmatpush3.bf16.msra.mxu1 %v2771_v13  ;;  %v2775_v35 = vld [vmem:[%s4118_s1 + $0x98] sm:$0xff]   ;;  %2512 = vmatpush3.bf16.msra.mxu0 %v2774_v31 }
  0x2d   : > { %v2435_v63 = vcombine.low %v848_v54, %v858_v58  ;;  %v234_v5 = vrot.slane %v233_v59, 4  ;;  %v869_v12 = vshll.u32 %v2342_v61, 16  ;;  %v873_v14 = vshrl.u32 %v2342_v61, 16  ;;  %v206_v25 = vld [vmem:[%s3059_s8 + $0x14] sm:$0x1]  ;;  %2575 = vmatprep.subr.bf16.mxu1 %v2773_v26  ;;  %v2776_v46 = vld [vmem:[%s4118_s1 + $0x60] sm:$0xff]  }
  0x2e   : > { %v229_v10 = vsel %vm3096_vm5, %v224_v0, %v228_v50  ;;  %v865_v17 = vrot.slane %v863_v7, 5  ;;  %v879_v18 = vshll.u32 %v2356_v2, 16  ;;  %v547_v21 = vshll.u32 %v3066_v8, 16  ;;  %v2322_v40 = vld [vmem:[%s3059_s8 + $0x18] sm:$0xe]  ;;  %v2777_v51 = vld [vmem:[%s4118_s1 + $0xe0] sm:$0xff]   ;;  %2513 = vmatprep.subr.bf16.mxu0 %v2776_v46 }
  0x2f   : > { %1379 = vrot.lane.b32.xlu0 %v2435_v63, %s2939_s11  ;;  %v239_v16 = vsel %vm3096_vm5, %v234_v5, %v238_v60  ;;  %v871_v23 = vrot.slane %v869_v12, 5  ;;  %v875_v24 = vrot.slane %v873_v14, 4  ;;  %v530_v27 = vrot.slane %v528_v62, 4  ;;  %v2343_v2 = vld [vmem:[%s3059_s8 + $0x30] sm:$0xf]  ;;  %v2778_v3 = vld [vmem:[%s4118_s1 + $0x20] sm:$0xff]  }
  0x30   : > { %v2387_v22 = vcombine.low %v229_v10, %v239_v16  ;;  %v533_v28 = vrot.slane %v531_v4, 5  ;;  %v866_v29 = vor.u32 %v865_v17, %v862_v11  ;;  %v241_v30 = vshrl.u32 %v191_v15, 16  ;;  %2576 = vmatpush3.bf16.msra.mxu1 %v2775_v35  ;;  %v2344_v7 = vld [vmem:[%s3059_s8 + $0x34] sm:$0xf]  ;;  %v3184_v12 = vld [vmem:[%s3059_s8 + $0x24] sm:$0xf]  ;;  %2514 = vmatpush3.bf16.msra.mxu0 %v2778_v3 }
  0x31   : > { %v876_v8 = vor.u32 %v875_v24, %v871_v23  ;;  %v881_v32 = vrot.slane %v879_v18, 5  ;;  %v244_v33 = vshll.u32 %v191_v15, 16  ;;  %v250_v34 = vshll.u32 %v192_v19, 16  ;;  %2577 = vmatprep.subr.bf16.mxu1 %v2777_v51  ;;  %v2357_v14 = vld [vmem:[%s3059_s8 + $0x38] sm:$0x1]  ;;  %s2843_s5 = scalar_lea.vmem %s4055_s16, 2048 }
  0x32   : > { %1171 = vrot.lane.b32.xlu1 %v2387_v22, %s2939_s11  ;;  %v867_v36 = vrot.slane %v866_v29, 4  ;;  %v243_v37 = vrot.slane %v241_v30, 4  ;;  %v254_v38 = vshrl.u32 %v192_v19, 16  ;;  %v260_v39 = vshll.u32 %v206_v25, 16  ;;  %v3193_v17 = vld [vmem:[%s3059_s8 + $0x28] sm:$0xf]  ;;  %p2844_p13 = scmp.ne.s32.totalorder %s4055_s16, %s2843_s5 }
  0x33   : > { %1245 = vrot.lane.b32.xlu0 %v2404_v6, %s2939_s11  ;;  %v877_v41 = vrot.slane %v876_v8, 4  ;;  %v246_v43 = vrot.slane %v244_v33, 5  ;;  %v252_v44 = vrot.slane %v250_v34, 5  ;;  %v534_v47 = vor.u32 %v533_v28, %v530_v27  ;;  %v193_v19 = vld [vmem:[%s3059_s8 + $0x18] sm:$0xf] }
  0x34   : > { %v552_v48 = vshrl.u32 %v3107_v56, 16  ;;  %v872_v49 = vsel %vm3096_vm5, %v867_v36, %v871_v23  ;;  %v256_v50 = vrot.slane %v254_v38, 4  ;;  %v2330_v54 = vrot.slane %v2322_v40, 9  ;;  %v194_v24 = vld [vmem:[%s3059_s8 + $0x1c] sm:$0xf]  ;;  %p2845_p0 = pnand %p2844_p13, %p3014_p3 }
  0x35   : > { %v882_v52 = vsel %vm3096_vm5, %v877_v41, %v881_v32  ;;  %v247_v53 = vor.u32 %v246_v43, %v243_v37  ;;  %v760_v55 = vrot.slane %v3110_v57, 5  ;;  %v262_v60 = vrot.slane %v260_v39, 5  ;;  %v207_v29 = vld [vmem:[%s3059_s8 + $0x20] sm:$0x1]  ;;  %v2323_v37 = vld [vmem:[%s3059_s8 + $0x24] sm:$0xe] }
  0x36   : > { %v2436_v58 = vcombine.low %v872_v49, %v882_v52  ;;  %v257_v59 = vor.u32 %v256_v50, %v252_v44  ;;  %v763_v61 = vrot.slane %v3151_v45, 5  ;;  %v3172_v4 = vrot.slane %v547_v21, 5  ;;  %v3206_v43 = vld [vmem:[%s3059_s8 + $0x2c] sm:$0x1]  ;;  %v2370_v42 = vld [vmem:[%s3059_s8 + $0x6c] sm:$0xe]  ;;  %p2846_p1 = pneg %p2845_p0 }
  0x37   : > { %v248_v62 = vrot.slane %v247_v53, 4  ;;  %v761_v63 = vsel %vm3039_vm2, %v2330_v54, %v760_v55  ;;  %v762_v0 = vrot.slane %v760_v55, 4  ;;  %v555_v5 = vshll.u32 %v3107_v56, 16  ;;  %v2779_v56 = vld [vmem:[%s4118_s1 + $0xa0] sm:$0xff]   ;;  %v2781_v50 = vld [vmem:[%s4118_s1 + $0xe8] sm:$0xff]  }
  0x38   : > { %1381 = vrot.lane.b32.xlu1 %v2436_v58, %s2939_s11  ;;  %v258_v6 = vrot.slane %v257_v59, 4  ;;  %v3177_v9 = vrot.slane %v534_v47, 4  ;;  %v554_v15 = vrot.slane %v552_v48, 4  ;;  %v884_v18 = vshrl.u32 %v2343_v2, 16  ;;  %2578 = vmatpush3.bf16.msra.mxu1 %v2779_v56 }
  0x39   : > { %v253_v10 = vsel %vm3096_vm5, %v248_v62, %v252_v44  ;;  %v764_v11 = vsel %vm3039_vm2, %v762_v0, %v763_v61  ;;  %v887_v22 = vshll.u32 %v2343_v2, 16  ;;  %v893_v23 = vshll.u32 %v2344_v7, 16  ;;  %v2780_v44 = vld [vmem:[%s4118_s1 + $0x68] sm:$0xff]   ;;  %2579 = vmatprep.subr.bf16.mxu1 %v2781_v50 }
  0x3a   : > { %v263_v13 = vsel %vm3096_vm5, %v258_v6, %v262_v60  ;;  %v2420_v16 = vcombine.low %v761_v63, %v764_v11  ;;  %v557_v25 = vrot.slane %v555_v5, 5  ;;  %v886_v26 = vrot.slane %v884_v18, 4  ;;  %2515 = vmatprep.subr.bf16.mxu0 %v2780_v44  ;;  %v2782_v61 = vld [vmem:[%s4118_s1 + $0x28] sm:$0xff]  }
  0x3b   : > { %v2388_v21 = vcombine.low %v253_v10, %v263_v13  ;;  %v897_v27 = vshrl.u32 %v2344_v7, 16  ;;  %v903_v28 = vshll.u32 %v2357_v14, 16  ;;  %v2405_v30 = vcombine.low %v3184_v12, %v3193_v17  ;;  %2516 = vmatpush3.bf16.msra.mxu0 %v2782_v61  ;;  %v2783_v13 = vld [vmem:[%s4118_s1 + $0xa8] sm:$0xff]   ;;  %v3270_v61 = vld [vmem:[%s3059_s8 + $0x38] sm:$0x1] }
  0x3c   : > { %1309 = vrot.lane.b32.xlu1 %v2420_v16, %s2939_s11  ;;  %v889_v31 = vrot.slane %v887_v22, 5  ;;  %v895_v8 = vrot.slane %v893_v23, 5  ;;  %v265_v32 = vshrl.u32 %v193_v19, 16  ;;  %v565_v33 = vshrl.u32 %v3110_v57, 16  ;;  %v2358_v22 = vld [vmem:[%s3059_s8 + $0x44] sm:$0x1]  ;;  %2580 = vmatpush3.bf16.msra.mxu1 %v2783_v13 }
  0x3d   : > { %1173 = vrot.lane.b32.xlu0 %v2388_v21, %s2939_s11  ;;  %v899_v34 = vrot.slane %v897_v27, 4  ;;  %v268_v35 = vshll.u32 %v193_v19, 16  ;;  %v274_v36 = vshll.u32 %v194_v24, 16  ;;  %v278_v40 = vshrl.u32 %v194_v24, 16  ;;  %v3240_v19 = vld [vmem:[%s3059_s8 + $0x30] sm:$0xf] }
  0x3e   : > { %v890_v38 = vor.u32 %v889_v31, %v886_v26  ;;  %v267_v39 = vrot.slane %v265_v32, 4  ;;  %v284_v41 = vshll.u32 %v207_v29, 16  ;;  %v905_v47 = vrot.slane %v903_v28, 5  ;;  %v2346_v21 = vld [vmem:[%s3059_s8 + $0x40] sm:$0xf] }
  0x3f   : > { %v900_v46 = vor.u32 %v899_v34, %v895_v8  ;;  %v270_v48 = vrot.slane %v268_v35, 5  ;;  %v276_v49 = vrot.slane %v274_v36, 5  ;;  %v558_v51 = vor.u32 %v557_v25, %v554_v15  ;;  %v2345_v15 = vld [vmem:[%s3059_s8 + $0x3c] sm:$0xf]  ;;  %v3250_v27 = vld [vmem:[%s3059_s8 + $0x34] sm:$0xf] }
  0x40   : > { %v891_v52 = vrot.slane %v890_v38, 4  ;;  %v280_v53 = vrot.slane %v278_v40, 4  ;;  %v2331_v54 = vrot.slane %v2323_v37, 9  ;;  %v767_v59 = vrot.slane %v3193_v17, 5  ;;  %v195_v28 = vld [vmem:[%s3059_s8 + $0x24] sm:$0xf] }
  0x41   : > { %1247 = vrot.lane.b32.xlu0 %v2405_v30, %s2939_s11  ;;  %v901_v55 = vrot.slane %v900_v46, 4  ;;  %v271_v58 = vor.u32 %v270_v48, %v267_v39  ;;  %v770_v60 = vrot.slane %v3206_v43, 5  ;;  %v576_v62 = vshrl.u32 %v3184_v12, 16  ;;  %v196_v36 = vld [vmem:[%s3059_s8 + $0x28] sm:$0xf] }
  0x42   : > { %v896_v63 = vsel %vm3096_vm5, %v891_v52, %v895_v8  ;;  %v281_v0 = vor.u32 %v280_v53, %v276_v49  ;;  %v286_v2 = vrot.slane %v284_v41, 5  ;;  %v768_v6 = vsel %vm3039_vm2, %v2331_v54, %v767_v59  ;;  %v208_v40 = vld [vmem:[%s3059_s8 + $0x2c] sm:$0x1]  ;;  %v2785_v54 = vld [vmem:[%s4118_s1 + $0xf0] sm:$0xff]  }
  0x43   : > { %v906_v3 = vsel %vm3096_vm5, %v901_v55, %v905_v47  ;;  %v272_v5 = vrot.slane %v271_v58, 4  ;;  %v769_v7 = vrot.slane %v767_v59, 4  ;;  %v3227_v10 = vrot.slane %v558_v51, 4  ;;  %2581 = vmatprep.subr.bf16.mxu1 %v2785_v54  ;;  %v209_v54 = vld [vmem:[%s3059_s8 + $0x38] sm:$0x1] }
  0x44   : > { %v3229_v11 = vrot.slane %v565_v33, 4  ;;  %v2437_v14 = vcombine.low %v896_v63, %v906_v3  ;;  %v282_v56 = vrot.slane %v281_v0, 4  ;;  %v579_v24 = vshll.u32 %v3184_v12, 16  ;;  %v2784_v12 = vld [vmem:[%s4118_s1 + $0x70] sm:$0xff]  }
  0x45   : > { %v277_v16 = vsel %vm3096_vm5, %v272_v5, %v276_v49  ;;  %v771_v18 = vsel %vm3039_vm2, %v769_v7, %v770_v60  ;;  %v3253_v29 = vrot.slane %v576_v62, 4  ;;  %v908_v31 = vshrl.u32 %v2345_v15, 16  ;;  %2517 = vmatprep.subr.bf16.mxu0 %v2784_v12  ;;  %v2324_v49 = vld [vmem:[%s3059_s8 + $0x30] sm:$0xe]  ;;  %v3493_v23 = vld [vmem:[%s3059_s8 + $0x74] sm:$0x1] }
  0x46   : > { %1383 = vrot.lane.b32.xlu1 %v2437_v14, %s2939_s11  ;;  %v287_v25 = vsel %vm3096_vm5, %v282_v56, %v286_v2  ;;  %v2421_v26 = vcombine.low %v768_v6, %v771_v18  ;;  %v911_v8 = vshll.u32 %v2345_v15, 16  ;;  %v589_v32 = vshrl.u32 %v3193_v17, 16  ;;  %v2786_v62 = vld [vmem:[%s4118_s1 + $0x30] sm:$0xff]   ;;  %4155 = vst [vmem:[#allocation13_spill] sm:$0xff] %v3493_v23 }
  0x47   : > { %v2389_v30 = vcombine.low %v277_v16, %v287_v25  ;;  %v917_v33 = vshll.u32 %v2346_v21, 16  ;;  %v921_v34 = vshrl.u32 %v2346_v21, 16  ;;  %v927_v35 = vshll.u32 %v2358_v22, 16  ;;  %2518 = vmatpush3.bf16.msra.mxu0 %v2786_v62  ;;  %v2787_v56 = vld [vmem:[%s4118_s1 + $0xb0] sm:$0xff]  }
  0x48   : > { %v2406_v37 = vcombine.low %v3240_v19, %v3250_v27  ;;  %v910_v38 = vrot.slane %v908_v31, 4  ;;  %v913_v39 = vrot.slane %v911_v8, 5  ;;  %v289_v41 = vshrl.u32 %v195_v28, 16  ;;  %2582 = vmatpush3.bf16.msra.mxu1 %v2787_v56  ;;  %v2347_v31 = vld [vmem:[%s3059_s8 + $0x48] sm:$0xf]  ;;  %v2788_v8 = vld [vmem:[%s4118_s1 + $0x78] sm:$0xff]  }
  0x49   : > { %1175 = vrot.lane.b32.xlu0 %v2389_v30, %s2939_s11  ;;  %v581_v44 = vrot.slane %v579_v24, 5  ;;  %v919_v46 = vrot.slane %v917_v33, 5  ;;  %v923_v47 = vrot.slane %v921_v34, 4  ;;  %v292_v48 = vshll.u32 %v195_v28, 16  ;;  %v3300_v34 = vld [vmem:[%s3059_s8 + $0x3c] sm:$0xf]  ;;  %2519 = vmatprep.subr.bf16.mxu0 %v2788_v8 }
  0x4a   : > { %1311 = vrot.lane.b32.xlu1 %v2421_v26, %s2939_s11  ;;  %v914_v50 = vor.u32 %v913_v39, %v910_v38  ;;  %v291_v51 = vrot.slane %v289_v41, 4  ;;  %v298_v52 = vshll.u32 %v196_v36, 16  ;;  %v302_v53 = vshrl.u32 %v196_v36, 16  ;;  %v2359_v36 = vld [vmem:[%s3059_s8 + $0x50] sm:$0x1]  ;;  %v2789_v41 = vld [vmem:[%s4118_s1 + $0xf8] sm:$0xff]  }
  0x4b   : > { %v924_v55 = vor.u32 %v923_v47, %v919_v46  ;;  %v929_v58 = vrot.slane %v927_v35, 5  ;;  %v294_v59 = vrot.slane %v292_v48, 5  ;;  %v308_v60 = vshll.u32 %v208_v40, 16  ;;  %v2348_v35 = vld [vmem:[%s3059_s8 + $0x4c] sm:$0xf]  ;;  %2583 = vmatprep.subr.bf16.mxu1 %v2789_v41 }
  0x4c   : > { %v915_v63 = vrot.slane %v914_v50, 4  ;;  %v300_v0 = vrot.slane %v298_v52, 5  ;;  %v304_v2 = vrot.slane %v302_v53, 4  ;;  %v2332_v3 = vrot.slane %v2324_v49, 9  ;;  %v3310_v39 = vld [vmem:[%s3059_s8 + $0x40] sm:$0xf] }
  0x4d   : > { %1249 = vrot.lane.b32.xlu0 %v2406_v37, %s2939_s11  ;;  %v582_v5 = vor.u32 %v581_v44, %v3253_v29  ;;  %v925_v6 = vrot.slane %v924_v55, 4  ;;  %v295_v7 = vor.u32 %v294_v59, %v291_v51  ;;  %v774_v14 = vrot.slane %v3250_v27, 5  ;;  %v197_v40 = vld [vmem:[%s3059_s8 + $0x30] sm:$0xf]  ;;  %v198_v49 = vld [vmem:[%s3059_s8 + $0x34] sm:$0xf] }
  0x4e   : > { %v920_v15 = vsel %vm3096_vm5, %v915_v63, %v919_v46  ;;  %v305_v13 = vor.u32 %v304_v2, %v300_v0  ;;  %v310_v16 = vrot.slane %v308_v60, 5  ;;  %v777_v18 = vrot.slane %v3270_v61, 5  ;;  %v2790_v50 = vld [vmem:[%s4118_s1 + $0x38] sm:$0xff]  }
  0x4f   : > { %v930_v21 = vsel %vm3096_vm5, %v925_v6, %v929_v58  ;;  %v296_v22 = vrot.slane %v295_v7, 4  ;;  %v775_v24 = vsel %vm3039_vm2, %v2332_v3, %v774_v14  ;;  %v776_v25 = vrot.slane %v774_v14, 4  ;;  %v2791_v55 = vld [vmem:[%s4118_s1 + $0xb8] sm:$0xff]   ;;  %2520 = vmatpush3.bf16.msra.mxu0 %v2790_v50  ;;  %v3333_v6 = vld [vmem:[%s3059_s8 + $0x44] sm:$0x1] }
  0x50   : > { %v3289_v28 = vrot.slane %v589_v32, 4  ;;  %v2438_v29 = vcombine.low %v920_v15, %v930_v21  ;;  %v306_v30 = vrot.slane %v305_v13, 4  ;;  %v3304_v32 = vrot.slane %v582_v5, 4  ;;  %v2325_v63 = vld [vmem:[%s3059_s8 + $0x3c] sm:$0xe]  ;;  %2584 = vmatpush3.bf16.msra.mxu1 %v2791_v55  ;;  %v3338_v13 = vld [vmem:[%s4118_s1 + $0x100] sm:$0xff]  }
  0x51   : > { %v301_v12 = vsel %vm3096_vm5, %v296_v22, %v300_v0  ;;  %v778_v33 = vsel %vm3039_vm2, %v776_v25, %v777_v18  ;;  %v932_v47 = vshrl.u32 %v2347_v31, 16  ;;  %v935_v48 = vshll.u32 %v2347_v31, 16  ;;  %4147 = vst [vmem:[#allocation5_spill] sm:$0xff] %v3338_v13  ;;  %2645 = vmatprep.subr.bf16.mxu0 %v3338_v13  ;;  %2669 = vmatprep.subr.bf16.mxu1 %v3338_v13  ;;  %v2813_v13 = vld [vmem:[%s3059_s8 + $0x8] sm:$0x1] }
  0x52   : > { %1385 = vrot.lane.b32.xlu1 %v2438_v29, %s2939_s11  ;;  %v311_v37 = vsel %vm3096_vm5, %v306_v30, %v310_v16  ;;  %v2422_v38 = vcombine.low %v775_v24, %v778_v33  ;;  %v941_v51 = vshll.u32 %v2348_v35, 16  ;;  %v945_v52 = vshrl.u32 %v2348_v35, 16 }
  0x53   : > { %v2390_v46 = vcombine.low %v301_v12, %v311_v37  ;;  %v951_v53 = vshll.u32 %v2359_v36, 16  ;;  %v2407_v58 = vcombine.low %v3300_v34, %v3310_v39  ;;  %v934_v59 = vrot.slane %v932_v47, 4 }
  0x54   : > { %v937_v60 = vrot.slane %v935_v48, 5  ;;  %v313_v62 = vshrl.u32 %v197_v40, 16  ;;  %v600_v0 = vshrl.u32 %v3240_v19, 16  ;;  %v603_v2 = vshll.u32 %v3240_v19, 16  ;;  %v3356_v48 = vld [vmem:[%s3059_s8 + $0x58] sm:$0xf] }
  0x55   : > { %1177 = vrot.lane.b32.xlu0 %v2390_v46, %s2939_s11  ;;  %v943_v3 = vrot.slane %v941_v51, 5  ;;  %v947_v5 = vrot.slane %v945_v52, 4  ;;  %v316_v56 = vshll.u32 %v197_v40, 16  ;;  %v322_v15 = vshll.u32 %v198_v49, 16 }
  0x56   : > { %1313 = vrot.lane.b32.xlu1 %v2422_v38, %s2939_s11  ;;  %v938_v7 = vor.u32 %v937_v60, %v934_v59  ;;  %v315_v14 = vrot.slane %v313_v62, 4  ;;  %v953_v18 = vrot.slane %v951_v53, 5  ;;  %v326_v21 = vshrl.u32 %v198_v49, 16  ;;  %v3349_v38 = vld [vmem:[%s3059_s8 + $0x54] sm:$0xf] }
  0x57   : > { %v948_v16 = vor.u32 %v947_v5, %v943_v3  ;;  %v332_v19 = vshll.u32 %v209_v54, 16  ;;  %v318_v24 = vrot.slane %v316_v56, 5  ;;  %v324_v25 = vrot.slane %v322_v15, 5  ;;  %v3365_v59 = vld [vmem:[%s3059_s8 + $0x4c] sm:$0xf] }
  0x58   : > { %v939_v22 = vrot.slane %v938_v7, 4  ;;  %v2333_v29 = vrot.slane %v2325_v63, 9  ;;  %v613_v30 = vshrl.u32 %v3250_v27, 16  ;;  %v328_v8 = vrot.slane %v326_v21, 4  ;;  %v2360_v60 = vld [vmem:[%s3059_s8 + $0x5c] sm:$0x1] }
  0x59   : > { %1251 = vrot.lane.b32.xlu0 %v2407_v58, %s2939_s11  ;;  %v949_v31 = vrot.slane %v948_v16, 4  ;;  %v781_v12 = vrot.slane %v3310_v39, 5  ;;  %v319_v35 = vor.u32 %v318_v24, %v315_v14  ;;  %v334_v36 = vrot.slane %v332_v19, 5  ;;  %v3362_v58 = vld [vmem:[%s3059_s8 + $0x48] sm:$0xf] }
  0x5a   : > { %v944_v33 = vsel %vm3096_vm5, %v939_v22, %v943_v3  ;;  %v784_v37 = vrot.slane %v3333_v6, 5  ;;  %v329_v41 = vor.u32 %v328_v8, %v324_v25  ;;  %v602_v49 = vrot.slane %v600_v0, 4  ;;  %v3372_v0 = vld [vmem:[%s3059_s8 + $0x3c] sm:$0xf]  ;;  %v3381_v14 = vld [vmem:[%s3059_s8 + $0x40] sm:$0xf] }
  0x5b   : > { %v954_v40 = vsel %vm3096_vm5, %v949_v31, %v953_v18  ;;  %v782_v46 = vsel %vm3039_vm2, %v2333_v29, %v781_v12  ;;  %v783_v47 = vrot.slane %v781_v12, 4  ;;  %v605_v50 = vrot.slane %v603_v2, 5  ;;  %v3386_v21 = vld [vmem:[%s3059_s8 + $0x44] sm:$0x1]  ;;  %v2326_v12 = vld [vmem:[%s3059_s8 + $0x48] sm:$0xe] }
  0x5c   : > { %v2439_v51 = vcombine.low %v944_v33, %v954_v40  ;;  %v320_v52 = vrot.slane %v319_v35, 4  ;;  %v330_v54 = vrot.slane %v329_v41, 4  ;;  %v3374_v2 = vrot.slane %v613_v30, 4 }
  0x5d   : > { %v785_v55 = vsel %vm3039_vm2, %v783_v47, %v784_v37  ;;  %v956_v5 = vshrl.u32 %v3349_v38, 16  ;;  %v959_v7 = vshll.u32 %v3349_v38, 16  ;;  %v606_v56 = vor.u32 %v605_v50, %v602_v49  ;;  %v3401_v49 = vld [vmem:[%s3059_s8 + $0x50] sm:$0x1] }
  0x5e   : > { %1387 = vrot.lane.b32.xlu1 %v2439_v51, %s2939_s11  ;;  %v325_v62 = vsel %vm3096_vm5, %v320_v52, %v324_v25  ;;  %v2423_v63 = vcombine.low %v782_v46, %v785_v55  ;;  %v335_v3 = vsel %vm3096_vm5, %v330_v54, %v334_v36  ;;  %v965_v16 = vshll.u32 %v3356_v48, 16 }
  0x5f   : > { %v2391_v15 = vcombine.low %v325_v62, %v335_v3  ;;  %v969_v18 = vshrl.u32 %v3356_v48, 16  ;;  %v958_v19 = vrot.slane %v956_v5, 4  ;;  %v961_v22 = vrot.slane %v959_v7, 5 }
  0x60   : > { %v975_v24 = vshll.u32 %v2360_v60, 16  ;;  %v4121_v25 = vrot.slane %v3356_v48, 5  ;;  %v2408_v29 = vcombine.low %v3362_v58, %v3365_v59  ;;  %v967_v30 = vrot.slane %v965_v16, 5 }
  0x61   : > { %1179 = vrot.lane.b32.xlu0 %v2391_v15, %s2939_s11  ;;  %v971_v31 = vrot.slane %v969_v18, 4  ;;  %v1099_v8 = vrot.slane %v2360_v60, 5  ;;  %v962_v33 = vor.u32 %v961_v22, %v958_v19  ;;  %v337_v37 = vshrl.u32 %v3372_v0, 16 }
  0x62   : > { %1315 = vrot.lane.b32.xlu1 %v2423_v63, %s2939_s11  ;;  %v977_v35 = vrot.slane %v975_v24, 5  ;;  %v1098_v36 = vrot.slane %v4121_v25, 4  ;;  %v340_v41 = vshll.u32 %v3372_v0, 16  ;;  %v346_v46 = vshll.u32 %v3381_v14, 16 }
  0x63   : > { %v972_v40 = vor.u32 %v971_v31, %v967_v30  ;;  %v350_v47 = vshrl.u32 %v3381_v14, 16  ;;  %v963_v50 = vrot.slane %v962_v33, 4  ;;  %v339_v52 = vrot.slane %v337_v37, 4  ;;  %v3422_v31 = vld [vmem:[%s3059_s8 + $0x64] sm:$0xf] }
  0x64   : > { %v3405_v51 = vsel %vm3039_vm2, %v1098_v36, %v1099_v8  ;;  %v356_v54 = vshll.u32 %v3386_v21, 16  ;;  %v342_v60 = vrot.slane %v340_v41, 5  ;;  %v348_v62 = vrot.slane %v346_v46, 5  ;;  %4150 = vst [vmem:[#allocation8_spill] sm:$0xff] %v3422_v31  ;;  %v3427_v36 = vld [vmem:[%s3059_s8 + $0x54] sm:$0xf] }
  0x65   : > { %4148 = vst [vmem:[#allocation6_spill] sm:$0xff] %v3405_v51  ;;  %1253 = vrot.lane.b32.xlu0 %v2408_v29, %s2939_s11  ;;  %v973_v55 = vrot.slane %v972_v40, 4  ;;  %v352_v63 = vrot.slane %v350_v47, 4  ;;  %v3409_v3 = vrot.slane %v606_v56, 4  ;;  %v968_v5 = vsel %vm3096_vm5, %v963_v50, %v967_v30  ;;  %v3419_v30 = vld [vmem:[%s3059_s8 + $0x60] sm:$0xf] }
  0x66   : > { %v358_v7 = vrot.slane %v356_v54, 5  ;;  %v2334_v15 = vrot.slane %v2326_v12, 9  ;;  %v343_v18 = vor.u32 %v342_v60, %v339_v52  ;;  %v788_v22 = vrot.slane %v3365_v59, 5  ;;  %4149 = vst [vmem:[#allocation7_spill] sm:$0xff] %v3419_v30  ;;  %v3430_v37 = vld [vmem:[%s3059_s8 + $0x58] sm:$0xf] }
  0x67   : > { %v978_v16 = vsel %vm3096_vm5, %v973_v55, %v977_v35  ;;  %v353_v19 = vor.u32 %v352_v63, %v348_v62  ;;  %v624_v24 = vshrl.u32 %v3300_v34, 16  ;;  %v791_v29 = vrot.slane %v3401_v49, 5  ;;  %v3434_v40 = vld [vmem:[%s3059_s8 + $0x68] sm:$0x1]  ;;  %v3446_v52 = vld [vmem:[%s3059_s8 + $0x4c] sm:$0xf] }
  0x68   : > { %v2440_v56 = vcombine.low %v968_v5, %v978_v16  ;;  %v344_v8 = vrot.slane %v343_v18, 4  ;;  %v789_v33 = vsel %vm3039_vm2, %v2334_v15, %v788_v22  ;;  %v790_v35 = vrot.slane %v788_v22, 4  ;;  %4151 = vst [vmem:[#allocation9_spill] sm:$0xff] %v3434_v40  ;;  %v3437_v41 = vld [vmem:[%s3059_s8 + $0x48] sm:$0xf] }
  0x69   : > { %v354_v12 = vrot.slane %v353_v19, 4  ;;  %4152 = vst [vmem:[#allocation10_spill] sm:$0xff] %v3437_v41  ;;  %v3449_v55 = vrot.slane %v624_v24, 4  ;;  %v3452_v5 = vld [vmem:[%s3059_s8 + $0x50] sm:$0x1]  ;;  %v980_v15 = vshrl.u32 %v3419_v30, 16  ;;  %v2409_v22 = vcombine.low %v3427_v36, %v3430_v37 }
  0x6a   : > { %1389 = vrot.lane.b32.xlu1 %v2440_v56, %s2939_s11  ;;  %v349_v46 = vsel %vm3096_vm5, %v344_v8, %v348_v62  ;;  %v792_v50 = vsel %vm3039_vm2, %v790_v35, %v791_v29  ;;  %v983_v62 = vshll.u32 %v3419_v30, 16  ;;  %v993_v16 = vshrl.u32 %v3422_v31, 16  ;;  %v2327_v18 = vld [vmem:[%s3059_s8 + $0x54] sm:$0xe]  ;;  %v3467_v35 = vld [vmem:[%s3059_s8 + $0x5c] sm:$0x1] }
  0x6b   : > { %v359_v47 = vsel %vm3096_vm5, %v354_v12, %v358_v7  ;;  %v2424_v63 = vcombine.low %v789_v33, %v792_v50  ;;  %v989_v7 = vshll.u32 %v3422_v31, 16  ;;  %v627_v19 = vshll.u32 %v3300_v34, 16 }
  0x6c   : > { %v2392_v60 = vcombine.low %v349_v46, %v359_v47  ;;  %v999_v24 = vshll.u32 %v3434_v40, 16  ;;  %v361_v56 = vshrl.u32 %v3437_v41, 16  ;;  %v982_v29 = vrot.slane %v980_v15, 4  ;;  %v2328_v40 = vld [vmem:[%s3059_s8 + $0x60] sm:$0xe] }
  0x6d   : > { %v985_v8 = vrot.slane %v983_v62, 5  ;;  %v991_v12 = vrot.slane %v989_v7, 5  ;;  %v995_v33 = vrot.slane %v993_v16, 4  ;;  %v364_v34 = vshll.u32 %v3437_v41, 16  ;;  %v408_v41 = vld [vmem:[%s3059_s8] sm:$0xe] }
  0x6e   : > { %1181 = vrot.lane.b32.xlu0 %v2392_v60, %s2939_s11  ;;  %1317 = vrot.lane.b32.xlu1 %v2424_v63, %s2939_s11  ;;  %v1001_v46 = vrot.slane %v999_v24, 5  ;;  %v363_v47 = vrot.slane %v361_v56, 4  ;;  %v370_v50 = vshll.u32 %v3446_v52, 16  ;;  %v374_v25 = vshrl.u32 %v3446_v52, 16 }
  0x6f   : > { %v986_v60 = vor.u32 %v985_v8, %v982_v29  ;;  %v996_v63 = vor.u32 %v995_v33, %v991_v12  ;;  %v380_v54 = vshll.u32 %v3452_v5, 16  ;;  %v637_v15 = vshrl.u32 %v3310_v39, 16 }
  0x70   : > { %v366_v62 = vrot.slane %v364_v34, 5  ;;  %v372_v7 = vrot.slane %v370_v50, 5  ;;  %v2335_v16 = vrot.slane %v2327_v18, 9  ;;  %v3475_v24 = vrot.slane %v627_v19, 5  ;;  %v3488_v50 = vld [vmem:[%s3059_s8 + $0x70] sm:$0xf] }
  0x71   : > { %v987_v56 = vrot.slane %v986_v60, 4  ;;  %v997_v53 = vrot.slane %v996_v63, 4  ;;  %v376_v29 = vrot.slane %v374_v25, 4  ;;  %v648_v8 = vshrl.u32 %v3362_v58, 16  ;;  %4154 = vst [vmem:[#allocation12_spill] sm:$0xff] %v3488_v50 }
  0x72   : > { %1255 = vrot.lane.b32.xlu0 %v2409_v22, %s2939_s11  ;;  %v367_v33 = vor.u32 %v366_v62, %v363_v47  ;;  %v795_v44 = vrot.slane %v3430_v37, 5  ;;  %v798_v26 = vrot.slane %v3467_v35, 5  ;;  %v3481_v22 = vld [vmem:[%s3059_s8 + $0x6c] sm:$0xf]  ;;  %v382_v25 = vrot.slane %v380_v54, 5 }
  0x73   : > { %4153 = vst [vmem:[#allocation11_spill] sm:$0xff] %v3481_v22  ;;  %v992_v18 = vsel %vm3096_vm5, %v987_v56, %v991_v12  ;;  %v1002_v19 = vsel %vm3096_vm5, %v997_v53, %v1001_v46  ;;  %v377_v34 = vor.u32 %v376_v29, %v372_v7  ;;  %v651_v20 = vshll.u32 %v3362_v58, 16  ;;  %v3497_v56 = vld [vmem:[%s3059_s8 + $0x60] sm:$0xf]  ;;  %v3500_v53 = vld [vmem:[%s3059_s8 + $0x64] sm:$0xf] }
  0x74   : > { %v2441_v47 = vcombine.low %v992_v18, %v1002_v19  ;;  %v368_v60 = vrot.slane %v367_v33, 4  ;;  %v796_v63 = vsel %vm3039_vm2, %v2335_v16, %v795_v44  ;;  %v797_v62 = vrot.slane %v795_v44, 4  ;;  %v3503_v54 = vld [vmem:[%s3059_s8 + $0x54] sm:$0xf]  ;;  %v3514_v58 = vld [vmem:[%s3059_s8 + $0x58] sm:$0xf] }
  0x75   : > { %v378_v12 = vrot.slane %v377_v34, 4  ;;  %4156 = vst [vmem:[#allocation14_spill] sm:$0xff] %v3503_v54  ;;  %v3506_v29 = vrot.slane %v637_v15, 4  ;;  %4157 = vst [vmem:[#allocation15_spill] sm:$0xff] %v3514_v58  ;;  %v1004_v15 = vshrl.u32 %v3481_v22, 16  ;;  %v1017_v33 = vshrl.u32 %v3488_v50, 16 }
  0x76   : > { %1391 = vrot.lane.b32.xlu1 %v2441_v47, %s2939_s11  ;;  %v373_v44 = vsel %vm3096_vm5, %v368_v60, %v372_v7  ;;  %v799_v16 = vsel %vm3039_vm2, %v797_v62, %v798_v26  ;;  %v3522_v34 = vld [vmem:[%s3059_s8 + $0x5c] sm:$0x1]  ;;  %v3524_v47 = vrot.slane %v648_v8, 4  ;;  %v1007_v7 = vshll.u32 %v3481_v22, 16 }
  0x77   : > { %v383_v18 = vsel %vm3096_vm5, %v378_v12, %v382_v25  ;;  %v2425_v19 = vcombine.low %v796_v63, %v799_v16  ;;  %4158 = vst [vmem:[#allocation16_spill] sm:$0xff] %v3522_v34  ;;  %v1013_v26 = vshll.u32 %v3488_v50, 16  ;;  %v3528_v60 = vrot.slane %v651_v20, 5 }
  0x78   : > { %v2393_v46 = vcombine.low %v373_v44, %v383_v18  ;;  %v1006_v62 = vrot.slane %v1004_v15, 4  ;;  %v1023_v25 = vshll.u32 %v3493_v23, 16  ;;  %v2410_v8 = vcombine.low %v3497_v56, %v3500_v53  ;;  %v3544_v23 = vld [vmem:[%s3059_s8 + $0x68] sm:$0x1] }
  0x79   : > { %v1009_v63 = vrot.slane %v1007_v7, 5  ;;  %v1015_v12 = vrot.slane %v1013_v26, 5  ;;  %v385_v44 = vshrl.u32 %v3503_v54, 16  ;;  %v672_v20 = vshrl.u32 %v3427_v36, 16 }
  0x7a   : > { %1183 = vrot.lane.b32.xlu0 %v2393_v46, %s2939_s11  ;;  %1319 = vrot.lane.b32.xlu1 %v2425_v19, %s2939_s11  ;;  %v1019_v16 = vrot.slane %v1017_v33, 4  ;;  %v388_v18 = vshll.u32 %v3503_v54, 16  ;;  %v394_v15 = vshll.u32 %v3514_v58, 16  ;;  %v398_v46 = vshrl.u32 %v3514_v58, 16 }
  0x7b   : > { %v1010_v30 = vor.u32 %v1009_v63, %v1006_v62  ;;  %v387_v31 = vrot.slane %v385_v44, 4  ;;  %v404_v19 = vshll.u32 %v3522_v34, 16  ;;  %v1025_v26 = vrot.slane %v1023_v25, 5 }
  0x7c   : > { %v1020_v7 = vor.u32 %v1019_v16, %v1015_v12  ;;  %v390_v51 = vrot.slane %v388_v18, 5  ;;  %v396_v22 = vrot.slane %v394_v15, 5  ;;  %v675_v33 = vshll.u32 %v3427_v36, 16  ;;  %v3554_v15 = vld [vmem:[%s3059_s8 + $0x4] sm:$0xf] }
  0x7d   : > { %v1011_v54 = vrot.slane %v1010_v30, 4  ;;  %v400_v50 = vrot.slane %v398_v46, 4  ;;  %v2336_v62 = vrot.slane %v2328_v40, 9  ;;  %v802_v58 = vrot.slane %v3500_v53, 5 }
  0x7e   : > { %1257 = vrot.lane.b32.xlu0 %v2410_v8, %s2939_s11  ;;  %v1021_v63 = vrot.slane %v1020_v7, 4  ;;  %v391_v44 = vor.u32 %v390_v51, %v387_v31  ;;  %v805_v34 = vrot.slane %v3544_v23, 5  ;;  %v406_v18 = vrot.slane %v404_v19, 5 }
  0x7f   : > { %v1016_v25 = vsel %vm3096_vm5, %v1011_v54, %v1015_v12  ;;  %v401_v16 = vor.u32 %v400_v50, %v396_v22  ;;  %v445_v36 = vrot.slane %v3554_v15, 5  ;;  %v803_v51 = vsel %vm3039_vm2, %v2336_v62, %v802_v58 }
  0x80   : > { %v1026_v30 = vsel %vm3096_vm5, %v1021_v63, %v1025_v26  ;;  %v392_v40 = vrot.slane %v391_v44, 4  ;;  %v804_v31 = vrot.slane %v802_v58, 4  ;;  %v696_v8 = vshrl.u32 %v3497_v56, 16  ;;  %v2814_v44 = vld [vmem:[%s3059_s8 + $0x10] sm:$0xf] }
  0x81   : > { %v2442_v46 = vcombine.low %v1016_v25, %v1026_v30  ;;  %v402_v54 = vrot.slane %v401_v16, 4  ;;  %v2287_v12 = vrot.slane %v408_v41, 9  ;;  %v447_v7 = vrot.slane %v445_v36, 4 }
  0x82   : > { %v397_v50 = vsel %vm3096_vm5, %v392_v40, %v396_v22  ;;  %v806_v19 = vsel %vm3039_vm2, %v804_v31, %v805_v34  ;;  %v448_v26 = vrot.slane %v2813_v13, 5  ;;  %v699_v63 = vshll.u32 %v3497_v56, 16 }
  0x83   : > { %1393 = vrot.lane.b32.xlu1 %v2442_v46, %s2939_s11  ;;  %v407_v58 = vsel %vm3096_vm5, %v402_v54, %v406_v18  ;;  %v2426_v62 = vcombine.low %v803_v51, %v806_v19  ;;  %v537_v41 = vshll.u32 %v2814_v44, 16  ;;  %v4159_v22 = vor.u32 %v3475_v24, %v3449_v55 }
  0x84   : > { %v643_v34 = vshll.u32 %v3333_v6, 16  ;;  %v2394_v16 = vcombine.low %v397_v50, %v407_v58  ;;  %v541_v13 = vshrl.u32 %v2814_v44, 16  ;;  %v654_v56 = vor.u32 %v3528_v60, %v3524_v47 }
  0x85   : > { %v3575_v25 = vrot.slane %v4159_v22, 4  ;;  %v657_v30 = vshll.u32 %v3365_v59, 16  ;;  %v661_v40 = vshrl.u32 %v3365_v59, 16  ;;  %v539_v18 = vrot.slane %v537_v41, 5 }
  0x86   : > { %1185 = vrot.lane.b32.xlu0 %v2394_v16, %s2939_s11  ;;  %v446_v51 = vsel %vm3039_vm2, %v2287_v12, %v445_v36  ;;  %v449_v55 = vsel %vm3039_vm2, %v447_v7, %v448_v26  ;;  %v543_v24 = vrot.slane %v541_v13, 4  ;;  %v4160_v31 = vshll.u32 %v3110_v57, 16 }
  0x87   : > { %v674_v47 = vrot.slane %v672_v20, 4  ;;  %v677_v60 = vrot.slane %v675_v33, 5  ;;  %v698_v54 = vrot.slane %v696_v8, 4  ;;  %v701_v50 = vrot.slane %v699_v63, 5  ;;  %1321 = vrot.lane.b32.xlu1 %v2426_v62, %s2939_s11  ;;  %v409_v33 = vld [vmem:[%s3059_s8 + $0xc] sm:$0xe] }
  0x88   : > { %v563_v46 = vrot.slane %v4160_v31, 5  ;;  %v544_v19 = vor.u32 %v543_v24, %v539_v18  ;;  %v4161_v7 = vshll.u32 %v3151_v45, 16  ;;  %v3596_v58 = vrot.slane %v654_v56, 4  ;;  %v3602_v8 = vld [vmem:[%s3059_s8 + $0x10] sm:$0xf] }
  0x89   : > { %v3598_v57 = vrot.slane %v661_v40, 4  ;;  %v2395_v20 = vcombine.low %v446_v51, %v449_v55  ;;  %v452_v63 = vrot.slane %v3602_v8, 5  ;;  %v685_v62 = vshrl.u32 %v3430_v37, 16  ;;  %v2816_v55 = vld [vmem:[%s3059_s8 + $0x14] sm:$0x1] }
  0x8a   : > { %v564_v36 = vsel %vm3096_vm5, %v3227_v10, %v563_v46  ;;  %v568_v12 = vor.u32 %v3229_v11, %v563_v46  ;;  %v573_v26 = vrot.slane %v4161_v7, 5  ;;  %v540_v10 = vsel %vm3096_vm5, %v3177_v9, %v539_v18 }
  0x8b   : > { %v545_v11 = vrot.slane %v544_v19, 4  ;;  %v678_v44 = vor.u32 %v677_v60, %v674_v47  ;;  %v702_v41 = vor.u32 %v701_v50, %v698_v54  ;;  %v709_v22 = vshrl.u32 %v3500_v53, 16 }
  0x8c   : > { %v569_v45 = vrot.slane %v568_v12, 4  ;;  %v4162_v16 = vshll.u32 %v3193_v17, 16  ;;  %v2288_v51 = vrot.slane %v409_v33, 9  ;;  %v455_v24 = vrot.slane %v2816_v55, 5 }
  0x8d   : > { %v550_v40 = vsel %vm3096_vm5, %v545_v11, %v3172_v4  ;;  %v454_v46 = vrot.slane %v452_v63, 4  ;;  %v667_v17 = vshll.u32 %v3401_v49, 16  ;;  %v4163_v54 = vshll.u32 %v3206_v43, 16  ;;  %v3651_v11 = vld [vmem:[%s3059_s8 + $0x18] sm:$0xe] }
  0x8e   : > { %v587_v13 = vrot.slane %v4162_v16, 5  ;;  %v574_v9 = vsel %vm3096_vm5, %v569_v45, %v573_v26  ;;  %v2411_v31 = vcombine.low %v540_v10, %v550_v40  ;;  %v3628_v19 = vrot.slane %v678_v44, 4  ;;  %v413_v16 = vld [vmem:[%s3059_s8 + $0x3c] sm:$0xe]  ;;  %v2818_v40 = vld [vmem:[%s3059_s8 + $0x18] sm:$0xf] }
  0x8f   : > { %v3619_v47 = vcombine.low %v564_v36, %v574_v9  ;;  %v597_v50 = vrot.slane %v4163_v54, 5  ;;  %v681_v12 = vshll.u32 %v3430_v37, 16  ;;  %v3631_v7 = vrot.slane %v685_v62, 4  ;;  %v3673_v9 = vld [vmem:[%s3059_s8 + $0x28] sm:$0xf] }
  0x90   : > { %v588_v4 = vsel %vm3096_vm5, %v3304_v32, %v587_v13  ;;  %v592_v60 = vor.u32 %v3289_v28, %v587_v13  ;;  %v691_v49 = vshll.u32 %v3467_v35, 16  ;;  %v705_v36 = vshll.u32 %v3500_v53, 16  ;;  %v2817_v13 = vld [vmem:[%s3059_s8] sm:$0xf] }
  0x91   : > { %v3635_v26 = vrot.slane %v709_v22, 4  ;;  %v4164_v28 = vshll.u32 %v3250_v27, 16  ;;  %v715_v33 = vshll.u32 %v3544_v23, 16  ;;  %v3644_v62 = vsel %vm3039_vm2, %v2288_v51, %v452_v63  ;;  %v3666_v51 = vld [vmem:[%s3059_s8 + $0x1c] sm:$0xf] }
  0x92   : > { %v593_v32 = vrot.slane %v592_v60, 4  ;;  %v3648_v10 = vsel %vm3039_vm2, %v454_v46, %v455_v24  ;;  %v4165_v22 = vshll.u32 %v3270_v61, 16  ;;  %v2427_v55 = vcombine.low %v2818_v40, %v3666_v51  ;;  %v3670_v24 = vld [vmem:[%s3059_s8 + $0x24] sm:$0xf] }
  0x93   : > { %v611_v43 = vrot.slane %v4164_v28, 5  ;;  %v2396_v61 = vcombine.low %v3644_v62, %v3648_v10  ;;  %v4166_v46 = vshll.u32 %v3310_v39, 16  ;;  %v483_v28 = vrot.slane %v3386_v21, 5  ;;  %v414_v10 = vld [vmem:[%s3059_s8 + $0x48] sm:$0xe] }
  0x94   : > { %v598_v27 = vsel %vm3096_vm5, %v593_v32, %v597_v50  ;;  %v621_v63 = vrot.slane %v4165_v22, 5  ;;  %v2292_v50 = vrot.slane %v413_v16, 9  ;;  %v480_v32 = vrot.slane %v3381_v14, 5 }
  0x95   : > { %v612_v44 = vsel %vm3096_vm5, %v3409_v3, %v611_v43  ;;  %v3677_v3 = vcombine.low %v588_v4, %v598_v27  ;;  %v635_v60 = vrot.slane %v4166_v46, 5  ;;  %v645_v39 = vrot.slane %v643_v34, 5 }
  0x96   : > { %v1244_v56 = vpop.permute.xlu0 %1243  ;;  %v482_v21 = vrot.slane %v480_v32, 4  ;;  %v659_v6 = vrot.slane %v657_v30, 5  ;;  %v2293_v16 = vrot.slane %v414_v10, 9 }
  0x97   : > { %v1454_v18 = vsel %vm1419_vm6, %v2395_v20, %v1244_v56  ;;  %v3639_v20 = vrot.slane %v702_v41, 4  ;;  %v616_v41 = vor.u32 %v3374_v2, %v611_v43  ;;  %v2379_v56 = vcombine.low %v2817_v13, %v3554_v15 }
  0x98   : > { %1899 = vmatprep.mubr.bf16.mxu0 %v1454_v18  ;;  %v2428_v2 = vcombine.low %v3670_v24, %v3673_v9  ;;  %v2289_v15 = vrot.slane %v3651_v11, 9  ;;  %v636_v43 = vsel %vm3096_vm5, %v3575_v25, %v635_v60  ;;  %v640_v62 = vor.u32 %v3506_v29, %v635_v60 }
  0x99   : > { %v617_v18 = vrot.slane %v616_v41, 4  ;;  %v2384_v25 = vcombine.low %v3372_v0, %v3381_v14  ;;  %v669_v29 = vrot.slane %v667_v17, 5  ;;  %v487_v13 = vrot.slane %v3446_v52, 5 }
  0x9a   : > { %v1308_v45 = vpop.permute.xlu1 %1307  ;;  %v641_v22 = vrot.slane %v640_v62, 4  ;;  %v660_v17 = vsel %vm3096_vm5, %v3596_v58, %v659_v6  ;;  %v664_v40 = vor.u32 %v3598_v57, %v659_v6  ;;  %v490_v60 = vrot.slane %v3452_v5, 5  ;;  %v4168_v57 = vld [vmem:[#allocation10_spill] sm:$0xff] }
  0x9b   : > { %v1486_v54 = vsel %vm1419_vm6, %v2411_v31, %v1308_v45  ;;  %v622_v4 = vsel %vm3096_vm5, %v617_v18, %v621_v63  ;;  %v3700_v31 = vsel %vm3039_vm2, %v2292_v50, %v480_v32  ;;  %v2432_v45 = vcombine.low %v3349_v38, %v3356_v48  ;;  %v4167_v32 = vld [vmem:[#allocation5_spill] sm:$0xff] }
  0x9c   : > { %v3696_v27 = vcombine.low %v612_v44, %v622_v4  ;;  %v2799_v44 = vld [vmem:[%s4118_s1 + $0x108] sm:$0xff]   ;;  %v3714_v63 = vsel %vm3039_vm2, %v482_v21, %v483_v28  ;;  %v646_v59 = vsel %vm3096_vm5, %v641_v22, %v645_v39  ;;  %v3729_v18 = vsel %vm3039_vm2, %v2293_v16, %v487_v13  ;;  %v3734_v4 = vld [vmem:[%s3059_s8 + $0x1c] sm:$0xf]  ;;  %v415_v39 = vld [vmem:[%s3059_s8 + $0x54] sm:$0xe] }
  0x9d   : > { %v2400_v30 = vcombine.low %v3700_v31, %v3714_v63  ;;  %v489_v46 = vrot.slane %v487_v13, 4  ;;  %v459_v58 = vrot.slane %v3734_v4, 5  ;;  %v665_v62 = vrot.slane %v664_v40, 4  ;;  %v2804_v21 = vld [vmem:[%s4118_s1 + $0x110] sm:$0xff]   ;;  %v4170_v16 = vld [vmem:[#allocation16_spill] sm:$0xff]  ;;  %v4172_v40 = vld [vmem:[#allocation11_spill] sm:$0xff] }
  0x9e   : > { %v693_v22 = vrot.slane %v691_v49, 5  ;;  %v2294_v35 = vrot.slane %v415_v39, 9  ;;  %v4169_v49 = vld [vmem:[#allocation15_spill] sm:$0xff]  ;;  %v4174_v11 = vrot.slane %v3356_v48, 5  ;;  %v4177_v48 = vld [vmem:[#allocation8_spill] sm:$0xff] }
  0x9f   : > { %v670_v37 = vsel %vm3096_vm5, %v665_v62, %v669_v29  ;;  %v497_v29 = vrot.slane %v4170_v16, 5  ;;  %v460_v24 = vsel %vm3039_vm2, %v2289_v15, %v459_v58 }
  0xa0   : > { %v3762_v6 = vcombine.low %v660_v17, %v670_v37  ;;  %v461_v17 = vrot.slane %v459_v58, 4 }
  0xa1   : > { %v1380_v41 = vpop.permute.xlu0 %1379 }
  0xa2   : > { %v1518_v34 = vsel %vm1419_vm6, %v2427_v55, %v1380_v41  ;;  %v3725_v55 = vcombine.low %v636_v43, %v646_v59  ;;  %v683_v43 = vrot.slane %v681_v12, 5  ;;  %v3749_v41 = vsel %vm3039_vm2, %v489_v46, %v490_v60  ;;  %v4171_v59 = vld [vmem:[#allocation12_spill] sm:$0xff] }
  0xa3   : > { %1996 = vmatprep.mubr.bf16.mxu1 %v1518_v34  ;;  %v2401_v12 = vcombine.low %v3729_v18, %v3749_v41  ;;  %v494_v34 = vrot.slane %v4169_v49, 5  ;;  %v2434_v46 = vcombine.low %v4172_v40, %v4171_v59  ;;  %v707_v60 = vrot.slane %v705_v36, 5 }
  0xa4   : > { %1997 = vmatmul.mubr.bf16.vlgmr.msra.gmra.mrb[0].mxu1 %v1486_v54  ;;  %v1172_v50 = vpop.permute.xlu1 %1171  ;;  %v2385_v54 = vcombine.low %v4168_v57, %v3446_v52 }
  0xa5   : > { %2673 = vmatpush3.bf16.msra.mxu1 %v4167_v32  ;;  %v1246_v28 = vpop.permute.xlu0 %1245  ;;  %v1422_v10 = vsel %vm1419_vm6, %v2379_v56, %v1172_v50  ;;  %v684_v56 = vsel %vm3096_vm5, %v3628_v19, %v683_v43  ;;  %v4173_v19 = vld [vmem:[#allocation14_spill] sm:$0xff]  ;;  %v2823_v50 = vld [vmem:[%s3059_s8 + $0x20] sm:$0x1]  ;;  %v3778_v62 = vsel %vm3039_vm2, %v2294_v35, %v494_v34  ;;  %v708_v53 = vsel %vm3096_vm5, %v3639_v20, %v707_v60  ;;  %v2824_v20 = vld [vmem:[%s3059_s8 + $0xc] sm:$0xf] }
  0xa6   : > { %v1458_v5 = vsel %vm1419_vm6, %v2396_v61, %v1246_v28  ;;  %2670 = vmatprep.subr.bf16.mxu1 %v2799_v44  ;;  %1900 = vmatmul.mubr.bf16.vlgmr.msra.gmra.mrb[0].mxu0 %v1422_v10  ;;  %v688_v61 = vor.u32 %v3631_v7, %v683_v43  ;;  %v2386_v7 = vcombine.low %v4173_v19, %v4169_v49  ;;  %v2809_v28 = vld [vmem:[%s4118_s1 + $0x118] sm:$0xff]   ;;  %v496_v43 = vrot.slane %v494_v34, 4 }
  0xa7   : > { %2646 = vmatpush3.bf16.msra.mxu0 %v4167_v32  ;;  %1907 = vmatprep.mubr.bf16.mxu0 %v1458_v5  ;;  %v462_v32 = vrot.slane %v2823_v50, 5  ;;  %v712_v36 = vor.u32 %v3635_v26, %v707_v60  ;;  %v717_v10 = vrot.slane %v715_v33, 5  ;;  %v2368_v5 = vld [vmem:[%s3059_s8 + $0x54] sm:$0xe]  ;;  %v2380_v33 = vcombine.low %v2824_v20, %v3602_v8 }
  0xa8   : > { %2647 = vmatprep.subr.bf16.mxu0 %v2799_v44  ;;  %v689_v13 = vrot.slane %v688_v61, 4  ;;  %v3793_v35 = vsel %vm3039_vm2, %v496_v43, %v497_v29  ;;  %v2378_v50 = vrot.slane %v2370_v42, 9 }
  0xa9   : > { %2674 = vmatpush3.bf16.msra.mxu1 %v2799_v44  ;;  %v2402_v23 = vcombine.low %v3778_v62, %v3793_v35  ;;  %v713_v26 = vrot.slane %v712_v36, 4  ;;  %v1110_v36 = vrot.slane %v4171_v59, 5  ;;  %v2364_v35 = vld [vmem:[%s3059_s8 + $0x24] sm:$0xe] }
  0xaa   : > { %2671 = vmatprep.subr.bf16.mxu1 %v2804_v21  ;;  %v694_v39 = vsel %vm3096_vm5, %v689_v13, %v693_v22  ;;  %v1382_v37 = vpop.permute.xlu1 %1381  ;;  %v4175_v13 = vld [vmem:[#allocation6_spill] sm:$0xff] }
  0xab   : > { %2648 = vmatpush3.bf16.msra.mxu0 %v2799_v44  ;;  %v3789_v61 = vcombine.low %v684_v56, %v694_v39  ;;  %v1522_v22 = vsel %vm1419_vm6, %v2428_v2, %v1382_v37  ;;  %v2376_v44 = vrot.slane %v2368_v5, 9  ;;  %v463_v2 = vsel %vm3039_vm2, %v461_v17, %v462_v32  ;;  %v4176_v32 = vld [vmem:[#allocation13_spill] sm:$0xff] }
  0xac   : > { %2649 = vmatprep.subr.bf16.mxu0 %v2804_v21  ;;  %2004 = vmatprep.mubr.bf16.mxu1 %v1522_v22  ;;  %v718_v56 = vsel %vm3096_vm5, %v713_v26, %v717_v10  ;;  %v1113_v43 = vrot.slane %v4176_v32, 5  ;;  %v3832_v5 = vsel %vm3039_vm2, %v2378_v50, %v1110_v36  ;;  %v1112_v37 = vrot.slane %v1110_v36, 4  ;;  %v2826_v22 = vld [vmem:[%s3059_s8 + $0x30] sm:$0xf]  ;;  %v3836_v26 = vld [vmem:[%s3059_s8 + $0x34] sm:$0xf] }
  0xad   : > { %2675 = vmatpush3.bf16.msra.mxu1 %v2804_v21  ;;  %v3811_v16 = vcombine.low %v708_v53, %v718_v56  ;;  %v3819_v15 = vsel %vm3039_vm2, %v2376_v44, %v4174_v11  ;;  %v411_v53 = vld [vmem:[%s3059_s8 + $0x24] sm:$0xe]  ;;  %v2828_v44 = vld [vmem:[%s3059_s8 + $0x2c] sm:$0x1]  ;;  %v412_v36 = vld [vmem:[%s3059_s8 + $0x30] sm:$0xe] }
  0xae   : > { %2672 = vmatprep.subr.bf16.mxu1 %v2809_v28  ;;  %v1310_v34 = vpop.permute.xlu1 %1309  ;;  %v2448_v60 = vcombine.low %v3819_v15, %v4175_v13  ;;  %v2290_v20 = vrot.slane %v411_v53, 9 }
  0xaf   : > { %2650 = vmatpush3.bf16.msra.mxu0 %v2804_v21  ;;  %v1174_v29 = vpop.permute.xlu0 %1173  ;;  %v1490_v8 = vsel %vm1419_vm6, %v3619_v47, %v1310_v34  ;;  %v2397_v21 = vcombine.low %v460_v24, %v463_v2  ;;  %v2825_v47 = vld [vmem:[%s3059_s8 + $0x28] sm:$0xf]  ;;  %v469_v24 = vrot.slane %v2828_v44, 5  ;;  %v3842_v2 = vsel %vm3039_vm2, %v1112_v37, %v1113_v43  ;;  %v2831_v37 = vld [vmem:[%s3059_s8 + $0x3c] sm:$0xf] }
  0xb0   : > { %2651 = vmatprep.subr.bf16.mxu0 %v2809_v28  ;;  %v1426_v58 = vsel %vm1419_vm6, %v2380_v33, %v1174_v29  ;;  %2005 = vmatmul.mubr.bf16.gmra.mrb[4].mxu1 %v1490_v8  ;;  %v466_v17 = vrot.slane %v2825_v47, 5  ;;  %v2450_v56 = vcombine.low %v3832_v5, %v3842_v2  ;;  %v2829_v29 = vld [vmem:[%s3059_s8 + $0x18] sm:$0xf] }
  0xb1   : > { %2676 = vmatpush3.bf16.msra.mxu1 %v2809_v28  ;;  %1908 = vmatmul.mubr.bf16.gmra.mrb[4].mxu0 %v1426_v58  ;;  %v2381_v8 = vcombine.low %v2829_v29, %v3734_v4  ;;  %v2833_v44 = vld [vmem:[%s3059_s8 + $0x38] sm:$0x1] }
  0xb2   : > { %v468_v33 = vrot.slane %v466_v17, 4  ;;  %v467_v42 = vsel %vm3039_vm2, %v2290_v20, %v466_v17  ;;  %v2291_v20 = vrot.slane %v412_v36, 9 }
  0xb3   : > { %2652 = vmatpush3.bf16.msra.mxu0 %v2809_v28  ;;  %v1248_v39 = vpop.permute.xlu0 %1247  ;;  %v2429_v28 = vcombine.low %v2826_v22, %v3836_v26  ;;  %v3861_v22 = vld [vmem:[%s3059_s8 + $0x40] sm:$0xf] }
  0xb4   : > { %v1462_v10 = vsel %vm1419_vm6, %v2397_v21, %v1248_v39  ;;  %v470_v58 = vsel %vm3039_vm2, %v468_v33, %v469_v24  ;;  %v2830_v39 = vld [vmem:[%s3059_s8 + $0x34] sm:$0xf]  ;;  %v476_v24 = vrot.slane %v2833_v44, 5  ;;  %v1082_v49 = vrot.slane %v3861_v22, 5 }
  0xb5   : > { %1915 = vmatprep.mubr.bf16.mxu0 %v1462_v10  ;;  %v2398_v43 = vcombine.low %v467_v42, %v470_v58  ;;  %v473_v17 = vrot.slane %v2830_v39, 5 }
  0xb7   : > { %v475_v33 = vrot.slane %v473_v17, 4 }
  0xb8   : > { %v1384_v34 = vpop.permute.xlu1 %1383 }
  0xb9   : > { %v1526_v11 = vsel %vm1419_vm6, %v2429_v28, %v1384_v34  ;;  %v2430_v28 = vcombine.low %v2831_v37, %v3861_v22  ;;  %v477_v42 = vsel %vm3039_vm2, %v475_v33, %v476_v24 }
  0xba   : > { %2012 = vmatprep.mubr.bf16.mxu1 %v1526_v11  ;;  %v474_v11 = vsel %vm3039_vm2, %v2291_v20, %v473_v17  ;;  %v2835_v17 = vld [vmem:[%s3059_s8 + $0x48] sm:$0xf] }
  0xbb   : > { %v1176_v21 = vpop.permute.xlu0 %1175 }
  0xbc   : > { %v1312_v50 = vpop.permute.xlu1 %1311  ;;  %v1430_v32 = vsel %vm1419_vm6, %v2381_v8, %v1176_v21 }
  0xbd   : > { %1916 = vmatmul.mubr.bf16.gmra.mrb[8].mxu0 %v1430_v32  ;;  %v1494_v4 = vsel %vm1419_vm6, %v3677_v3, %v1312_v50  ;;  %v2834_v3 = vld [vmem:[%s3059_s8 + $0x24] sm:$0xf]  ;;  %v2399_v32 = vcombine.low %v474_v11, %v477_v42  ;;  %v2363_v42 = vld [vmem:[%s3059_s8 + $0x18] sm:$0xe] }
  0xbe   : > { %2013 = vmatmul.mubr.bf16.gmra.mrb[8].mxu1 %v1494_v4  ;;  %v2382_v29 = vcombine.low %v2834_v3, %v2825_v47  ;;  %v2371_v57 = vrot.slane %v2363_v42, 9 }
  0xbf   : > { %v1250_v53 = vpop.permute.xlu0 %1249 }
  0xc0   : > { %v1466_v10 = vsel %vm1419_vm6, %v2398_v43, %v1250_v53  ;;  %v2836_v53 = vld [vmem:[%s3059_s8 + $0x4c] sm:$0xf] }
  0xc1   : > { %1923 = vmatprep.mubr.bf16.mxu0 %v1466_v10  ;;  %v2431_v36 = vcombine.low %v2835_v17, %v2836_v53  ;;  %v1068_v17 = vrot.slane %v3673_v9, 5  ;;  %v1103_v9 = vrot.slane %v4177_v48, 5 }
  0xc4   : > { %v1386_v34 = vpop.permute.xlu1 %1385 }
  0xc5   : > { %v1530_v8 = vsel %vm1419_vm6, %v2430_v28, %v1386_v34  ;;  %v2837_v28 = vld [vmem:[%s3059_s8 + $0x30] sm:$0xf] }
  0xc6   : > { %2020 = vmatprep.mubr.bf16.mxu1 %v1530_v8  ;;  %v2383_v20 = vcombine.low %v2837_v28, %v2830_v39  ;;  %v2365_v28 = vld [vmem:[%s3059_s8 + $0x30] sm:$0xe] }
  0xc7   : > { %v1178_v58 = vpop.permute.xlu0 %1177 }
  0xc8   : > { %v1314_v21 = vpop.permute.xlu1 %1313  ;;  %v1434_v50 = vsel %vm1419_vm6, %v2382_v29, %v1178_v58  ;;  %v1089_v58 = vrot.slane %v2836_v53, 5 }
  0xc9   : > { %1924 = vmatmul.mubr.bf16.gmra.mrb[12].mxu0 %v1434_v50  ;;  %v1498_v47 = vsel %vm1419_vm6, %v3696_v27, %v1314_v21  ;;  %v2367_v21 = vld [vmem:[%s3059_s8 + $0x48] sm:$0xe] }
  0xca   : > { %2021 = vmatmul.mubr.bf16.gmra.mrb[12].mxu1 %v1498_v47 }
  0xcb   : > { %v1252_v43 = vpop.permute.xlu0 %1251 }
  0xcc   : > { %v1470_v4 = vsel %vm1419_vm6, %v2399_v32, %v1252_v43  ;;  %v2838_v32 = vld [vmem:[%s3059_s8 + $0x20] sm:$0x1]  ;;  %v2375_v43 = vrot.slane %v2367_v21, 9 }
  0xcd   : > { %1931 = vmatprep.mubr.bf16.mxu0 %v1470_v4  ;;  %v1064_v47 = vrot.slane %v2838_v32, 5  ;;  %v1091_v4 = vrot.slane %v1089_v58, 4 }
  0xd0   : > { %v1388_v10 = vpop.permute.xlu1 %1387 }
  0xd1   : > { %v1534_v37 = vsel %vm1419_vm6, %v2431_v36, %v1388_v10  ;;  %v1090_v10 = vsel %vm3039_vm2, %v2375_v43, %v1089_v58 }
  0xd2   : > { %2028 = vmatprep.mubr.bf16.mxu1 %v1534_v37 }
  0xd3   : > { %v1180_v33 = vpop.permute.xlu0 %1179 }
  0xd4   : > { %v1316_v44 = vpop.permute.xlu1 %1315  ;;  %v1438_v24 = vsel %vm1419_vm6, %v2383_v20, %v1180_v33  ;;  %v2369_v33 = vld [vmem:[%s3059_s8 + $0x60] sm:$0xe] }
  0xd5   : > { %v1502_v27 = vsel %vm1419_vm6, %v3725_v55, %v1316_v44  ;;  %1932 = vmatmul.mubr.bf16.gmra.mrb[16].mxu0 %v1438_v24  ;;  %v1070_v44 = vrot.slane %v1068_v17, 4  ;;  %v2840_v24 = vld [vmem:[%s3059_s8 + $0x2c] sm:$0x1]  ;;  %v2377_v40 = vrot.slane %v2369_v33, 9 }
  0xd6   : > { %2029 = vmatmul.mubr.bf16.gmra.mrb[16].mxu1 %v1502_v27  ;;  %v1071_v27 = vrot.slane %v2840_v24, 5 }
  0xd7   : > { %v1254_v34 = vpop.permute.xlu0 %1253 }
  0xd8   : > { %v1474_v3 = vsel %vm1419_vm6, %v2400_v30, %v1254_v34  ;;  %v2372_v34 = vrot.slane %v2364_v35, 9 }
  0xd9   : > { %1939 = vmatprep.mubr.bf16.mxu0 %v1474_v3  ;;  %v2841_v3 = vld [vmem:[%s3059_s8 + $0x38] sm:$0x1] }
  0xdc   : > { %v1390_v29 = vpop.permute.xlu1 %1389 }
  0xdd   : > { %v1538_v39 = vsel %vm1419_vm6, %v2432_v45, %v1390_v29  ;;  %v4178_v45 = vld [vmem:[#allocation7_spill] sm:$0xff]  ;;  %v1078_v29 = vrot.slane %v2841_v3, 5 }
  0xde   : > { %2036 = vmatprep.mubr.bf16.mxu1 %v1538_v39  ;;  %v2433_v0 = vcombine.low %v4178_v45, %v4177_v48  ;;  %v1072_v45 = vsel %vm3039_vm2, %v1070_v44, %v1071_v27 }
  0xe0   : > { %v1182_v8 = vpop.permute.xlu0 %1181  ;;  %v1318_v11 = vpop.permute.xlu1 %1317 }
  0xe1   : > { %v1442_v55 = vsel %vm1419_vm6, %v2384_v25, %v1182_v8  ;;  %v1506_v31 = vsel %vm1419_vm6, %v3762_v6, %v1318_v11  ;;  %v2373_v11 = vrot.slane %v2365_v28, 9 }
  0xe2   : > { %1940 = vmatmul.mubr.bf16.gmra.mrb[20].mxu0 %v1442_v55  ;;  %2037 = vmatmul.mubr.bf16.gmra.mrb[20].mxu1 %v1506_v31  ;;  %v4179_v31 = vld [vmem:[#allocation9_spill] sm:$0xff] }
  0xe4   : > { %v1256_v63 = vpop.permute.xlu0 %1255 }
  0xe5   : > { %v1478_v38 = vsel %vm1419_vm6, %v2401_v12, %v1256_v63  ;;  %v1061_v12 = vrot.slane %v3666_v51, 5  ;;  %v1106_v63 = vrot.slane %v4179_v31, 5 }
  0xe6   : > { %1947 = vmatprep.mubr.bf16.mxu0 %v1478_v38 }
  0xe7   : > { %v1062_v53 = vsel %vm3039_vm2, %v2371_v57, %v1061_v12 }
  0xe8   : > { %v1392_v14 = vpop.permute.xlu1 %1391 }
  0xe9   : > { %v1542_v25 = vsel %vm1419_vm6, %v2433_v0, %v1392_v14  ;;  %v1069_v0 = vsel %vm3039_vm2, %v2372_v34, %v1068_v17  ;;  %v1104_v14 = vsel %vm3039_vm2, %v2377_v40, %v1103_v9 }
  0xea   : > { %2044 = vmatprep.mubr.bf16.mxu1 %v1542_v25 }
  0xec   : > { %v1184_v30 = vpop.permute.xlu0 %1183  ;;  %v1320_v6 = vpop.permute.xlu1 %1319 }
  0xed   : > { %v1446_v18 = vsel %vm1419_vm6, %v2385_v54, %v1184_v30  ;;  %v1510_v41 = vsel %vm1419_vm6, %v3789_v61, %v1320_v6  ;;  %v1063_v54 = vrot.slane %v1061_v12, 4  ;;  %v2839_v61 = vld [vmem:[%s3059_s8 + $0x50] sm:$0x1]  ;;  %v2444_v30 = vcombine.low %v1069_v0, %v1072_v45  ;;  %v2842_v6 = vld [vmem:[%s3059_s8 + $0x44] sm:$0x1] }
  0xee   : > { %1948 = vmatmul.mubr.bf16.gmra.mrb[24].mxu0 %v1446_v18  ;;  %2045 = vmatmul.mubr.bf16.gmra.mrb[24].mxu1 %v1510_v41  ;;  %v1092_v51 = vrot.slane %v2839_v61, 5  ;;  %v1085_v18 = vrot.slane %v2842_v6, 5  ;;  %v1084_v12 = vrot.slane %v1082_v49, 4 }
  0xef   : > { %v1065_v62 = vsel %vm3039_vm2, %v1063_v54, %v1064_v47 }
  0xf0   : > { %v1258_v50 = vpop.permute.xlu0 %1257  ;;  %v1093_v37 = vsel %vm3039_vm2, %v1091_v4, %v1092_v51  ;;  %v1086_v21 = vsel %vm3039_vm2, %v1084_v12, %v1085_v18 }
  0xf1   : > { %v1482_v52 = vsel %vm1419_vm6, %v2402_v23, %v1258_v50  ;;  %v1075_v23 = vrot.slane %v3836_v26, 5  ;;  %v2443_v26 = vcombine.low %v1062_v53, %v1065_v62  ;;  %v2447_v8 = vcombine.low %v1090_v10, %v1093_v37 }
  0xf2   : > { %1955 = vmatprep.mubr.bf16.mxu0 %v1482_v52 }
  0xf3   : > { %v1077_v55 = vrot.slane %v1075_v23, 4  ;;  %v1076_v19 = vsel %vm3039_vm2, %v2373_v11, %v1075_v23 }
  0xf5   : > { %v1394_v36 = vpop.permute.xlu1 %1393 }
  0xf6   : > { %v1546_v20 = vsel %vm1419_vm6, %v2434_v46, %v1394_v36  ;;  %v1105_v46 = vrot.slane %v1103_v9, 4 }
  0xf7   : > { %2052 = vmatprep.mubr.bf16.mxu1 %v1546_v20 }
  0xf8   : > { %v1186_v39 = vpop.permute.xlu0 %1185  ;;  %v1107_v25 = vsel %vm3039_vm2, %v1105_v46, %v1106_v63 }
  0xf9   : > { %v1322_v38 = vpop.permute.xlu1 %1321  ;;  %v1450_v59 = vsel %vm1419_vm6, %v2386_v7, %v1186_v39  ;;  %v1079_v7 = vsel %vm3039_vm2, %v1077_v55, %v1078_v29  ;;  %v2449_v42 = vcombine.low %v1104_v14, %v1107_v25 }
  0xfa   : > { %1956 = vmatmul.mubr.bf16.gmra.mrb[28].mxu0 %v1450_v59  ;;  %v1514_v48 = vsel %vm1419_vm6, %v3811_v16, %v1322_v38  ;;  %v2366_v16 = vld [vmem:[%s3059_s8 + $0x3c] sm:$0xe]  ;;  %v2445_v41 = vcombine.low %v1076_v19, %v1079_v7  ;;  %s2847_s8 = sshll.u32 %s2940_s6, 4  ;;  %s2848_s8 = int_to_ptr.vmem [resolvable:$false] %s2847_s8 }
  0xfb   : > { %2053 = vmatmul.mubr.bf16.gmra.mrb[28].mxu1 %v1514_v48  ;;  %2653 = vmatprep.mubr.msk.bf16.mxu0 %vm1419_vm6, %v2443_v26  ;;  %v2374_v22 = vrot.slane %v2366_v16, 9  ;;  %s2849_s9 = scalar_lea.vmem %s2848_s8, 4096  ;;  %p2850_p2 = scmp.lt.s32.totalorder %s4055_s16, %s2848_s8 }
  0xfc   : > { %2661 = vmatprep.mubr.msk.bf16.mxu1 %vm1419_vm6, %v2447_v8  ;;  %p2851_p4 = scmp.lt.s32.totalorder %s2849_s9, %s2843_s5 }
  0xfd   : > { %v1083_v58 = vsel %vm3039_vm2, %v2374_v22, %v1082_v49 }
  0xfe   : > { %v2446_v50 = vcombine.low %v1083_v58, %v1086_v21  ;;  %p2852_p5 = por %p2851_p4, %p2850_p2 }
 0x100   : > { %p2853_p6 = pnand %p2852_p5, %p2846_p1 }
 0x102   : > { %2654 = vmatmul.mubr.msk.bf16.vlgmr.msra.gmra.mrb[32].mxu0 %vm1419_vm6, %v2444_v30 }
 0x103   : > { %2662 = vmatmul.mubr.msk.bf16.vlgmr.msra.gmra.mrb[32].mxu1 %vm1419_vm6, %v2448_v60  ;;  %2657 = vmatprep.mubr.msk.bf16.mxu0 %vm1419_vm6, %v2445_v41 }
 0x104   : > { %2665 = vmatprep.mubr.msk.bf16.mxu1 %vm1419_vm6, %v2449_v42 }
 0x10a   : > { %2658 = vmatmul.mubr.msk.bf16.gmra.mrb[36].mxu0 %vm1419_vm6, %v2446_v50 }
 0x10b   : > { %2666 = vmatmul.mubr.msk.bf16.gmra.mrb[36].mxu1 %vm1419_vm6, %v2450_v56 }
 0x177   : > { %v2585_v15 = vpop.f32.mrb[0].mxu1 }
 0x178   : > { %v2586_v13 = vpop.f32.mrb[1].mxu1 }
 0x179   : > { %v2587_v60 = vadd.f32 %v2586_v13, %v2585_v15  ;;  %v2588_v32 = vpop.f32.mrb[2].mxu1  ;;  %v2521_v47 = vpop.f32.mrb[0].mxu0 }
 0x17a   : > { %v2589_v52 = vpop.f32.mrb[3].mxu1  ;;  %v2522_v57 = vpop.f32.mrb[1].mxu0 }
 0x17b   : > { %v2590_v54 = vadd.f32 %v2589_v52, %v2588_v32  ;;  %v2523_v61 = vadd.f32 %v2522_v57, %v2521_v47  ;;  %v2524_v51 = vpop.f32.mrb[2].mxu0 }
 0x17c   : > { %v2525_v43 = vpop.f32.mrb[3].mxu0 }
 0x17d   : > { %v1902_v5 = vadd.f32 %v2523_v61, %v3981_v1  ;;  %v2526_v2 = vadd.f32 %v2525_v43, %v2524_v51 }
 0x17f   : > { %v1905_v56 = vadd.f32 %v2526_v2, %v3981_v1  ;;  %v3985_v4 = vadd.f32 %v2587_v60, %v1902_v5 }
 0x181   : > { %v3987_v17 = vadd.f32 %v2590_v54, %v1905_v56 }
 0x183   : > { %v2591_v53 = vpop.f32.mrb[4].mxu1 }
 0x184   : > { %v2527_v62 = vpop.f32.mrb[4].mxu0  ;;  %v2592_v35 = vpop.f32.mrb[5].mxu1 }
 0x185   : > { %v2528_v23 = vpop.f32.mrb[5].mxu0  ;;  %v2593_v36 = vadd.f32 %v2592_v35, %v2591_v53  ;;  %v2594_v10 = vpop.f32.mrb[6].mxu1 }
 0x186   : > { %v2529_v37 = vadd.f32 %v2528_v23, %v2527_v62  ;;  %v2530_v28 = vpop.f32.mrb[6].mxu0  ;;  %v2595_v9 = vpop.f32.mrb[7].mxu1 }
 0x187   : > { %v2531_v20 = vpop.f32.mrb[7].mxu0  ;;  %v2596_v33 = vadd.f32 %v2595_v9, %v2594_v10 }
 0x188   : > { %v1910_v44 = vadd.f32 %v2529_v37, %v3981_v1  ;;  %v2532_v24 = vadd.f32 %v2531_v20, %v2530_v28 }
 0x18a   : > { %v1913_v27 = vadd.f32 %v2532_v24, %v3981_v1  ;;  %v3991_v26 = vadd.f32 %v2593_v36, %v1910_v44 }
 0x18c   : > { %v3993_v34 = vadd.f32 %v2596_v33, %v1913_v27 }
 0x190   : > { %v2533_v3 = vpop.f32.mrb[8].mxu0 }
 0x191   : > { %v2534_v29 = vpop.f32.mrb[9].mxu0  ;;  %v2597_v39 = vpop.f32.mrb[8].mxu1 }
 0x192   : > { %v2535_v8 = vadd.f32 %v2534_v29, %v2533_v3  ;;  %v2536_v11 = vpop.f32.mrb[10].mxu0  ;;  %v2598_v55 = vpop.f32.mrb[9].mxu1 }
 0x193   : > { %v2599_v31 = vadd.f32 %v2598_v55, %v2597_v39  ;;  %v2537_v63 = vpop.f32.mrb[11].mxu0  ;;  %v2600_v38 = vpop.f32.mrb[10].mxu1 }
 0x194   : > { %v1918_v59 = vadd.f32 %v2535_v8, %v3981_v1  ;;  %v2538_v40 = vadd.f32 %v2537_v63, %v2536_v11  ;;  %v2601_v46 = vpop.f32.mrb[11].mxu1 }
 0x195   : > { %v2602_v48 = vadd.f32 %v2601_v46, %v2600_v38 }
 0x196   : > { %v1921_v45 = vadd.f32 %v2538_v40, %v3981_v1  ;;  %v3997_v0 = vadd.f32 %v2599_v31, %v1918_v59 }
 0x198   : > { %v3999_v49 = vadd.f32 %v2602_v48, %v1921_v45 }
 0x19c   : > { %v2539_v19 = vpop.f32.mrb[12].mxu0 }
 0x19d   : > { %v2540_v7 = vpop.f32.mrb[13].mxu0  ;;  %v2603_v16 = vpop.f32.mrb[12].mxu1 }
 0x19e   : > { %v2541_v14 = vadd.f32 %v2540_v7, %v2539_v19  ;;  %v2542_v25 = vpop.f32.mrb[14].mxu0  ;;  %v2604_v30 = vpop.f32.mrb[13].mxu1 }
 0x19f   : > { %v2605_v6 = vadd.f32 %v2604_v30, %v2603_v16  ;;  %v2543_v18 = vpop.f32.mrb[15].mxu0  ;;  %v2606_v41 = vpop.f32.mrb[14].mxu1 }
 0x1a0   : > { %v1926_v22 = vadd.f32 %v2541_v14, %v3981_v1  ;;  %v2544_v12 = vadd.f32 %v2543_v18, %v2542_v25  ;;  %v2607_v42 = vpop.f32.mrb[15].mxu1 }
 0x1a1   : > { %v2608_v58 = vadd.f32 %v2607_v42, %v2606_v41 }
 0x1a2   : > { %v1929_v21 = vadd.f32 %v2544_v12, %v3981_v1  ;;  %v4003_v50 = vadd.f32 %v2605_v6, %v1926_v22 }
 0x1a4   : > { %v4005_v15 = vadd.f32 %v2608_v58, %v1929_v21 }
 0x1a8   : > { %v2545_v13 = vpop.f32.mrb[16].mxu0 }
 0x1a9   : > { %v2609_v60 = vpop.f32.mrb[16].mxu1  ;;  %v2546_v32 = vpop.f32.mrb[17].mxu0 }
 0x1aa   : > { %v2610_v47 = vpop.f32.mrb[17].mxu1  ;;  %v2547_v52 = vadd.f32 %v2546_v32, %v2545_v13  ;;  %v2548_v57 = vpop.f32.mrb[18].mxu0 }
 0x1ab   : > { %v2611_v54 = vadd.f32 %v2610_v47, %v2609_v60  ;;  %v2612_v61 = vpop.f32.mrb[18].mxu1  ;;  %v2549_v51 = vpop.f32.mrb[19].mxu0 }
 0x1ac   : > { %v2613_v43 = vpop.f32.mrb[19].mxu1  ;;  %v1934_v5 = vadd.f32 %v2547_v52, %v3981_v1  ;;  %v2550_v2 = vadd.f32 %v2549_v51, %v2548_v57 }
 0x1ad   : > { %v2614_v56 = vadd.f32 %v2613_v43, %v2612_v61 }
 0x1ae   : > { %v1937_v53 = vadd.f32 %v2550_v2, %v3981_v1  ;;  %v4009_v62 = vadd.f32 %v2611_v54, %v1934_v5 }
 0x1b0   : > { %v4011_v35 = vadd.f32 %v2614_v56, %v1937_v53 }
 0x1b5   : > { %v2551_v23 = vpop.f32.mrb[20].mxu0  ;;  %v2615_v36 = vpop.f32.mrb[20].mxu1 }
 0x1b6   : > { %v2552_v10 = vpop.f32.mrb[21].mxu0  ;;  %v2616_v37 = vpop.f32.mrb[21].mxu1 }
 0x1b7   : > { %v2553_v28 = vadd.f32 %v2552_v10, %v2551_v23  ;;  %v2554_v9 = vpop.f32.mrb[22].mxu0  ;;  %v2617_v20 = vadd.f32 %v2616_v37, %v2615_v36  ;;  %v2618_v33 = vpop.f32.mrb[22].mxu1 }
 0x1b8   : > { %v2555_v44 = vpop.f32.mrb[23].mxu0  ;;  %v2619_v24 = vpop.f32.mrb[23].mxu1 }
 0x1b9   : > { %v1942_v27 = vadd.f32 %v2553_v28, %v3981_v1  ;;  %v2556_v3 = vadd.f32 %v2555_v44, %v2554_v9  ;;  %v2620_v29 = vadd.f32 %v2619_v24, %v2618_v33 }
 0x1bb   : > { %v1945_v39 = vadd.f32 %v2556_v3, %v3981_v1  ;;  %v2039_v8 = vadd.f32 %v2617_v20, %v1942_v27 }
 0x1bd   : > { %v2042_v11 = vadd.f32 %v2620_v29, %v1945_v39 }
 0x1c1   : > { %v2557_v55 = vpop.f32.mrb[24].mxu0  ;;  %v2621_v31 = vpop.f32.mrb[24].mxu1 }
 0x1c2   : > { %v2558_v63 = vpop.f32.mrb[25].mxu0  ;;  %v2622_v38 = vpop.f32.mrb[25].mxu1 }
 0x1c3   : > { %v2559_v59 = vadd.f32 %v2558_v63, %v2557_v55  ;;  %v2560_v40 = vpop.f32.mrb[26].mxu0  ;;  %v2623_v46 = vadd.f32 %v2622_v38, %v2621_v31  ;;  %v2624_v48 = vpop.f32.mrb[26].mxu1 }
 0x1c4   : > { %v2561_v45 = vpop.f32.mrb[27].mxu0  ;;  %v2625_v19 = vpop.f32.mrb[27].mxu1 }
 0x1c5   : > { %v1950_v7 = vadd.f32 %v2559_v59, %v3981_v1  ;;  %v2562_v16 = vadd.f32 %v2561_v45, %v2560_v40  ;;  %v2626_v14 = vadd.f32 %v2625_v19, %v2624_v48 }
 0x1c7   : > { %v1953_v25 = vadd.f32 %v2562_v16, %v3981_v1  ;;  %v2047_v30 = vadd.f32 %v2623_v46, %v1950_v7 }
 0x1c9   : > { %v4017_v6 = vadd.f32 %v2626_v14, %v1953_v25 }
 0x1cd   : > { %v2563_v18 = vpop.f32.mrb[28].mxu0 }
 0x1ce   : > { %v2564_v41 = vpop.f32.mrb[29].mxu0  ;;  %v2627_v22 = vpop.f32.mrb[28].mxu1 }
 0x1cf   : > { %v2565_v12 = vadd.f32 %v2564_v41, %v2563_v18  ;;  %v2566_v42 = vpop.f32.mrb[30].mxu0  ;;  %v2628_v58 = vpop.f32.mrb[29].mxu1 }
 0x1d0   : > { %v2629_v21 = vadd.f32 %v2628_v58, %v2627_v22  ;;  %v2567_v13 = vpop.f32.mrb[31].mxu0  ;;  %v2630_v60 = vpop.f32.mrb[30].mxu1 }
 0x1d1   : > { %v1958_v32 = vadd.f32 %v2565_v12, %v3981_v1  ;;  %v2568_v47 = vadd.f32 %v2567_v13, %v2566_v42  ;;  %v2631_v52 = vpop.f32.mrb[31].mxu1 }
 0x1d2   : > { %v2632_v57 = vadd.f32 %v2631_v52, %v2630_v60 }
 0x1d3   : > { %v1961_v54 = vadd.f32 %v2568_v47, %v3981_v1  ;;  %v2055_v61 = vadd.f32 %v2629_v21, %v1958_v32 }
 0x1d5   : > { %v2655_v51 = vpop.f32.mrb[32].mxu0  ;;  %v2058_v43 = vadd.f32 %v2632_v57, %v1961_v54 }
 0x1d6   : > { %v2104_v5 = vadd.f32 %v2655_v51, %v3991_v26  ;;  %v2095_v2 = vpop.f32.mrb[33].mxu0  ;;  %v2663_v56 = vpop.f32.mrb[32].mxu1 }
 0x1d7   : > { %v2096_v53 = vadd.f32 %v2095_v2, %v3985_v4  ;;  %v2136_v23 = vadd.f32 %v2663_v56, %v2039_v8  ;;  %v2656_v36 = vpop.f32.mrb[34].mxu0  ;;  %v2127_v10 = vpop.f32.mrb[33].mxu1 }
 0x1d8   : > { %2160 = vst [vmem:[%s4026_s20 + $0x10] sm:$0xff] %v2104_v5  ;;  %v2107_v1 = vadd.f32 %v2656_v36, %v3993_v34  ;;  %v2128_v26 = vadd.f32 %v2127_v10, %v4009_v62  ;;  %v2098_v37 = vpop.f32.mrb[35].mxu0  ;;  %v2664_v4 = vpop.f32.mrb[34].mxu1 }
 0x1d9   : > { %2158 = vst [vmem:[%s4026_s20] sm:$0xff] %v2096_v53  ;;  %2168 = vst [vmem:[%s4026_s20 + $0x50] sm:$0xff] %v2136_v23  ;;  %v2099_v28 = vadd.f32 %v2098_v37, %v3987_v17  ;;  %v2139_v9 = vadd.f32 %v2664_v4, %v2042_v11  ;;  %v2130_v20 = vpop.f32.mrb[35].mxu1 }
 0x1da   : > { %2161 = vst [vmem:[%s4026_s20 + $0x18] sm:$0xff] %v2107_v1  ;;  %2166 = vst [vmem:[%s4026_s20 + $0x40] sm:$0xff] %v2128_v26  ;;  %v2131_v33 = vadd.f32 %v2130_v20, %v4011_v35 }
 0x1db   : > { %2159 = vst [vmem:[%s4026_s20 + $0x8] sm:$0xff] %v2099_v28  ;;  %2169 = vst [vmem:[%s4026_s20 + $0x58] sm:$0xff] %v2139_v9 }
 0x1dc   : > { %2167 = vst [vmem:[%s4026_s20 + $0x48] sm:$0xff] %v2131_v33 }
 0x1dd   : > { %v2659_v34 = vpop.f32.mrb[36].mxu0 }
 0x1de   : > { %v2120_v62 = vadd.f32 %v2659_v34, %v4003_v50  ;;  %v2111_v44 = vpop.f32.mrb[37].mxu0  ;;  %v2667_v24 = vpop.f32.mrb[36].mxu1 }
 0x1df   : > { %v2112_v17 = vadd.f32 %v2111_v44, %v3997_v0  ;;  %v2152_v27 = vadd.f32 %v2667_v24, %v2055_v61  ;;  %v2660_v3 = vpop.f32.mrb[38].mxu0  ;;  %v2143_v35 = vpop.f32.mrb[37].mxu1 }
 0x1e0   : > { %2164 = vst [vmem:[%s4026_s20 + $0x30] sm:$0xff] %v2120_v62  ;;  %v2123_v29 = vadd.f32 %v2660_v3, %v4005_v15  ;;  %v2144_v39 = vadd.f32 %v2143_v35, %v2047_v30  ;;  %v2114_v50 = vpop.f32.mrb[39].mxu0  ;;  %v2668_v8 = vpop.f32.mrb[38].mxu1 }
 0x1e1   : > { %2162 = vst [vmem:[%s4026_s20 + $0x20] sm:$0xff] %v2112_v17  ;;  %2172 = vst [vmem:[%s4026_s20 + $0x70] sm:$0xff] %v2152_v27  ;;  %v2115_v0 = vadd.f32 %v2114_v50, %v3999_v49  ;;  %v2155_v11 = vadd.f32 %v2668_v8, %v2058_v43  ;;  %v2146_v55 = vpop.f32.mrb[39].mxu1 }
 0x1e2   : > { %2165 = vst [vmem:[%s4026_s20 + $0x38] sm:$0xff] %v2123_v29  ;;  %2170 = vst [vmem:[%s4026_s20 + $0x60] sm:$0xff] %v2144_v39  ;;  %v2147_v15 = vadd.f32 %v2146_v55, %v4017_v6 }
 0x1e3   : > { %2163 = vst [vmem:[%s4026_s20 + $0x28] sm:$0xff] %v2115_v0  ;;  %2173 = vst [vmem:[%s4026_s20 + $0x78] sm:$0xff] %v2155_v11 }
 0x1e4   : > { %2171 = vst [vmem:[%s4026_s20 + $0x68] sm:$0xff] %v2147_v15 }
 0x1e5   : > { %2856 = shalt.err (!%p2853_p6)
}
 0x1e6   : > { %s2857_s7 = scalar_lea.hbm %s4053_s29, 2048  ;;  %s2861_s21 = scalar_lea.hbm %s4120_s3, 8192 }
 0x1e7   : > { %p2858_p7 = scmp.ne.s32.totalorder %s4053_s29, %s2857_s7  ;;  %p2862_p11 = scmp.lt.u32.totalorder %s4053_s29, %s4120_s3 }
 0x1e8   : > { %p2863_p12 = scmp.lt.u32.totalorder %s2861_s21, %s2857_s7  ;;  %p2865_p0 = scmp.lt.u32.totalorder %s2857_s7, %s4053_s29 }
 0x1e9   : > { %p2859_p9 = pnand %p2858_p7, %p3014_p3 }
 0x1ea   : > { %p2864_p13 = por %p2863_p12, %p2862_p11 }
 0x1eb   : > { %p2860_p10 = pneg %p2859_p9 }
 0x1ec   : > { %p2866_p1 = por %p2865_p0, %p2864_p13 }
 0x1ee   : > { %p2867_p2 = pnand %p2866_p1, %p2860_p10 }
 0x1f0   : > { %2870 = shalt.err (!%p2867_p2)
}
 0x1f1   : > { %s2941_s15 = smov 128   ;;  %s2942_s11 = smov 8  }
 0x1f2   : > { %2678 = dma.vmem_to_hbm [thread:$0]  (%p3014_p3), %s4055_s16, 2048, %s4053_s29, %s4065_s4, %s2941_s15, %s2941_s15, %s2942_s11  }
 0x1f3 PF: > { %p2684_p4 = scmp.ge.s32.totalorder %s2937_s19, 2  ;;  %s2206_s28 = sand.u32 1, %s2909_s12  }
 0x1f4   : > { %s2207_s5 = scalar_lea.sflag [#allocation3], %s2206_s28 }
 0x1f5   : > { %p2681_p5 = pnand %p2684_p4, %p3023_p8 }
 0x1f7   : > { %2904 = dma.done.wait (!%p2681_p5), %s2207_s5, 2048  }
 0x1f8   : > { %2906 = vsyncadd (!%p2681_p5), %s2207_s5, 4294965248  ;;  %s16_s19 = sadd.s32 1, %s2937_s19   ;;  %s4180_s12 = smov %s2913_s13 }
 0x1f9   : > { %p13_p6 = scmp.ge.s32.totalorder %s16_s19, 6   ;;  %s4181_s13 = smov %s2917_s14 }
 0x1fa   : > { %s4182_s14 = smov %s3032_s30  ;;  %s4183_s15 = smov %s2929_s17 }
 0x1fb   : > { %s4184_s16 = smov %s2933_s18  ;;  %s4185_s17 = smov %s4188_s22 }
 0x1fc   : > { %s4186_s18 = smov %s4192_s23  ;;  %15 = sbr.rel (!%p13_p6) target bundleno = 5 (0x5), region = 70 }
 0x203   :  { %2212 = vsyncpa [#allocation3], 1 }
 0x204   :  { %2214 = vsyncpa [#allocation3 + $0x1], 1 }

</bundles_post_ra>
